<compile_context>
chip_gen: v7x
topology: tpu7x:2x2x1
jax: 0.10.0
libtpu: 0.0.40
codegen_flags: <defaults>
</compile_context>

<pallas_src>
import numpy as np
import jax
import jax.numpy as jnp
from jax.experimental import pallas as pl
from jax.experimental.pallas import tpu as pltpu

# ----- module "parameters" (deterministic, from __init__) --------------------
N_FREQS = 12
N_MASKING_STEP = 5000
# freq_bands = 2 ** linspace(0, N_freqs-1, N_freqs)  -> exact powers of two
FREQ_BANDS = (2.0 ** np.linspace(0.0, N_FREQS - 1, N_FREQS)).astype(np.float32)


def compute_mask(global_step, n_freqs=N_FREQS, n_masking_step=N_MASKING_STEP,
                 training=True):
    """update_step() mask schedule (host-side training state, not forward math)."""
    if n_masking_step <= 0 or global_step is None or (not training):
        return jnp.ones((n_freqs,), jnp.float32)
    t = (global_step / n_masking_step) * n_freqs - jnp.arange(n_freqs, dtype=jnp.float32)
    return (1.0 - jnp.cos(jnp.pi * jnp.clip(t, 0.0, 1.0))) / 2.0


def _cdiv(a, b):
    return -(-a // b)


def _round_up(n, m):
    return ((n + m - 1) // m) * m


# ----- in-kernel helpers ------------------------------------------------------
def _lane_tile(x, reps):
    """Replicate x (rows, C) -> (rows, C*reps) along lanes with O(log reps) concats
    (all copies identical, order irrelevant)."""
    if reps == 1:
        return x
    pows = [x]                                   # pows[i] = 2**i copies of x
    while (1 << len(pows)) <= reps:
        pows.append(jnp.concatenate([pows[-1], pows[-1]], axis=-1))
    parts = []
    r = reps
    for i in range(len(pows) - 1, -1, -1):
        if r >= (1 << i):
            parts.append(pows[i])
            r -= (1 << i)
    if len(parts) == 1:
        return parts[0]
    return jnp.concatenate(parts, axis=-1)


# ----- Pallas kernels ---------------------------------------------------------
def _pbf_kernel_wide(coef_ref, x_ref, o_ref):
    # coef_ref: VMEM (3, out_dim) f32 -- row0: freq, row1: phase (0 / pi/2), row2: mask
    # x_ref:    VMEM (TM, C)
    # o_ref:    VMEM (TM, out_dim)
    x = x_ref[...].astype(jnp.float32)
    reps = o_ref.shape[-1] // x.shape[-1]          # 2 * N_FREQS
    xr = _lane_tile(x, reps)                       # (TM, out_dim), lane-replicated
    freq = coef_ref[0:1, :]
    phase = coef_ref[1:2, :]
    m = coef_ref[2:3, :]
    # cos(z) = sin(z + pi/2): one transcendental per output vreg, one full-tile store.
    o_ref[...] = (jnp.sin(xr * freq + phase) * m).astype(o_ref.dtype)


def _pbf_kernel_recurrence(coef_ref, x_ref, o_ref):
    # Large-C path: one width-2C transcendental + double-angle recurrence per band.
    x = x_ref[...].astype(jnp.float32)
    C = x.shape[-1]
    m = coef_ref[2:3, :]                           # wide mask row
    half_pi = np.float32(np.pi / 2.0)
    sc = jnp.sin(jnp.concatenate([x, x + half_pi], axis=-1))   # [sin(x) | cos(x)]
    s = sc[:, :C]
    c = sc[:, C:]
    chunks = []
    for k in range(N_FREQS):
        chunks.append(s)
        chunks.append(c)
        if k + 1 < N_FREQS:
            # Exact identity (bands are powers of 2). The (2sc, c^2-s^2) form keeps
            # the error-vector growth at exactly 2x per doubling (~6e-4 abs at k=11).
            s, c = 2.0 * (s * c), c * c - s * s
    out = jnp.concatenate(chunks, axis=-1)         # (TM, out_dim), lane-dense
    o_ref[...] = (out * m).astype(o_ref.dtype)


# ----- tile sizing ------------------------------------------------------------
def _pick_tile(n_rows, c, out_dim, vmem_budget_bytes):
    """Row-tile size from a VMEM byte budget; accounts for 128-lane padding,
    double-buffered in/out blocks and ~2 full-width f32 temporaries."""
    c_pad = _round_up(max(c, 1), 128)
    o_pad = _round_up(out_dim, 128)
    bytes_per_row = 4 * (2 * c_pad + 2 * o_pad + 2 * o_pad)
    tile = vmem_budget_bytes // bytes_per_row
    tile = min(tile, 8192)                         # amortization plateaus; bound step latency
    if n_rows > 8:                                 # >= 2 grid steps => both v7x TCs get work
        tile = min(tile, _round_up(_cdiv(n_rows, 2), 8))
    tile = max(8, (tile // 8) * 8)                 # sublane (8) granularity
    return int(tile)


# ----- wrapper ----------------------------------------------------------------
def progressive_band_frequency(x, mask, *, tile_rows=None, vmem_limit_bytes=None):
    """x: [..., C] -> [..., C * 2 * N_FREQS]; mask: (N_FREQS,) progressive band mask."""
    orig_shape = x.shape
    C = int(orig_shape[-1])
    out_dim = C * 2 * N_FREQS
    xf = x.reshape(-1, C)                          # free reshape; no dtype cast here
    N = xf.shape[0]

    # Generation-aware VMEM budget (v7x: 64 MiB/TC -> <=48 MiB; v5e/v6e: 128 MiB -> 96 MiB).
    if vmem_limit_bytes is None:
        try:
            phys = int(pltpu.get_tpu_info().vmem_capacity_bytes)
        except Exception:
            phys = 64 * 1024 * 1024
        if phys < 16 * 1024 * 1024:
            phys = 64 * 1024 * 1024
        vmem_limit_bytes = min(phys * 3 // 4, 96 * 1024 * 1024)
    vmem_limit_bytes = int(vmem_limit_bytes)
    if tile_rows is None:
        tile_rows = _pick_tile(N, C, out_dim, vmem_limit_bytes * 3 // 4)
    tile = int(tile_rows)
    grid = (_cdiv(N, tile),)                       # boundary block clipped by Pallas

    # Per-output-column constants (concat order: sin f0 | cos f0 | sin f1 | ...).
    col = np.arange(out_dim)
    freq_full = FREQ_BANDS[col // (2 * C)].astype(np.float32)
    phase_full = np.where((col // C) % 2 == 1, np.pi / 2.0, 0.0).astype(np.float32)
    mask_full = jnp.repeat(mask.astype(jnp.float32), 2 * C)      # runtime mask, expanded
    coef = jnp.stack([jnp.asarray(freq_full), jnp.asarray(phase_full), mask_full], axis=0)

    use_recurrence = C >= 32                       # below this, width-C ops are lane-starved
    kernel = _pbf_kernel_recurrence if use_recurrence else _pbf_kernel_wide
    itemsize = np.dtype(x.dtype).itemsize
    if use_recurrence:
        cost = pl.CostEstimate(
            flops=N * (4 * C * (N_FREQS - 1) + 2 * out_dim),
            transcendentals=N * 2 * C,
            bytes_accessed=N * C * itemsize + N * out_dim * itemsize + 3 * out_dim * 4)
    else:
        cost = pl.CostEstimate(
            flops=6 * N * out_dim,
            transcendentals=N * out_dim,
            bytes_accessed=N * C * itemsize + N * out_dim * itemsize + 3 * out_dim * 4)

    out = pl.pallas_call(
        kernel,
        out_shape=jax.ShapeDtypeStruct((N, out_dim), x.dtype),
        grid=grid,
        in_specs=[
            pl.BlockSpec((3, out_dim), lambda i: (0, 0)),   # coef: VMEM-resident across grid
            pl.BlockSpec((tile, C), lambda i: (i, 0)),
        ],
        out_specs=pl.BlockSpec((tile, out_dim), lambda i: (i, 0)),
        compiler_params=pltpu.CompilerParams(
            dimension_semantics=("parallel",),              # shards across v7x's 2 TCs
            vmem_limit_bytes=vmem_limit_bytes,
        ),
        cost_estimate=cost,
    )(coef, xf)

    return out.reshape(*orig_shape[:-1], out_dim)


# ----- pure-JAX reference -----------------------------------------------------
def pbf_reference(x, mask):
    outs = []
    for f in range(N_FREQS):
        xf = float(FREQ_BANDS[f]) * x
        outs.append(jnp.sin(xf) * mask[f])
        outs.append(jnp.cos(xf) * mask[f])
    return jnp.concatenate(outs, -1)


if __name__ == "__main__":
    key = jax.random.PRNGKey(0)
    k1, k2 = jax.random.split(key)

    # --- Case 1: typical encoding input (C=4), mid-training progressive mask ---
    x1 = jax.random.uniform(k1, (2, 128, 4), jnp.float32, minval=-1.0, maxval=1.0)
    mask1 = compute_mask(global_step=2500, training=True)
    out1 = jax.block_until_ready(progressive_band_frequency(x1, mask1))
    ref1 = pbf_reference(x1, mask1)
    assert out1.shape == (2, 128, 4 * 2 * N_FREQS), out1.shape
    np.testing.assert_allclose(np.asarray(out1), np.asarray(ref1), atol=3e-3, rtol=3e-3)

    # --- Case 2: wide channels (C=64) -> double-angle recurrence path, ---------
    # --- ragged row count to exercise cdiv-grid boundary clipping, eval mask ---
    x2 = jax.random.uniform(k2, (3, 100, 64), jnp.float32, minval=-1.0, maxval=1.0)
    mask2 = compute_mask(global_step=None, training=False)   # all-ones: all bands live
    out2 = jax.block_until_ready(progressive_band_frequency(x2, mask2))
    ref2 = pbf_reference(x2, mask2)
    assert out2.shape == (3, 100, 64 * 2 * N_FREQS), out2.shape
    np.testing.assert_allclose(np.asarray(out2), np.asarray(ref2), atol=3e-3, rtol=3e-3)

    print("KERNEL_OK")
</pallas_src>

<mosaic_0001>
module attributes {stable_mosaic.version = 11 : i64} {
  func.func @_pbf_kernel_wide(%arg0: i32, %arg1: memref<3x96xf32, #tpu.memory_space<vmem>>, %arg2: memref<128x4xf32, #tpu.memory_space<vmem>>, %arg3: memref<128x96xf32, #tpu.memory_space<vmem>>) attributes {dimension_semantics = [#tpu.dimension_semantics<parallel>], iteration_bounds = array<i64: 2>, scalar_prefetch = 0 : i64, scratch_operands = 0 : i64, tpu.core_type = #tpu.core_type<tc>, window_params = [{pipeline_mode = #tpu.pipeline_mode<synchronous>, transform_indices = @transform_0, window_bounds = array<i64: 3, 96>}, {transform_indices = @transform_1, window_bounds = array<i64: 128, 4>}, {transform_indices = @transform_2, window_bounds = array<i64: 128, 96>}]} {
    %c0 = arith.constant 0 : index
    %c0_0 = arith.constant 0 : index
    %0 = vector.load %arg2[%c0, %c0_0] : memref<128x4xf32, #tpu.memory_space<vmem>>, vector<128x4xf32>
    %1 = tpu.concatenate %0, %0 in 1 : vector<128x4xf32>, vector<128x4xf32> -> vector<128x8xf32>
    %2 = tpu.concatenate %1, %1 in 1 : vector<128x8xf32>, vector<128x8xf32> -> vector<128x16xf32>
    %3 = tpu.concatenate %2, %2 in 1 : vector<128x16xf32>, vector<128x16xf32> -> vector<128x32xf32>
    %4 = tpu.concatenate %3, %3 in 1 : vector<128x32xf32>, vector<128x32xf32> -> vector<128x64xf32>
    %5 = tpu.concatenate %4, %3 in 1 : vector<128x64xf32>, vector<128x32xf32> -> vector<128x96xf32>
    %c0_1 = arith.constant 0 : index
    %c0_2 = arith.constant 0 : index
    %6 = vector.load %arg1[%c0_1, %c0_2] : memref<3x96xf32, #tpu.memory_space<vmem>>, vector<1x96xf32>
    %c1 = arith.constant 1 : index
    %c0_3 = arith.constant 0 : index
    %7 = vector.load %arg1[%c1, %c0_3] : memref<3x96xf32, #tpu.memory_space<vmem>>, vector<1x96xf32>
    %c2 = arith.constant 2 : index
    %c0_4 = arith.constant 0 : index
    %8 = vector.load %arg1[%c2, %c0_4] : memref<3x96xf32, #tpu.memory_space<vmem>>, vector<1x96xf32>
    %9 = vector.broadcast %6 : vector<1x96xf32> to vector<128x96xf32>
    %10 = arith.mulf %5, %9 : vector<128x96xf32>
    %11 = vector.broadcast %7 : vector<1x96xf32> to vector<128x96xf32>
    %12 = arith.addf %10, %11 : vector<128x96xf32>
    %13 = math.sin %12 : vector<128x96xf32>
    %14 = vector.broadcast %8 : vector<1x96xf32> to vector<128x96xf32>
    %15 = arith.mulf %13, %14 : vector<128x96xf32>
    %c0_5 = arith.constant 0 : index
    %c0_6 = arith.constant 0 : index
    %16 = vector.load %arg3[%c0_5, %c0_6] : memref<128x96xf32, #tpu.memory_space<vmem>>, vector<128x96xf32>
    tpu.vector_store %arg3[%c0_5, %c0_6], %15 {strides = array<i32>} : memref<128x96xf32, #tpu.memory_space<vmem>>, vector<128x96xf32>,
    return
  }
  func.func @transform_0(%arg0: i32) -> (i32, i32) {
    %c0_i32 = arith.constant 0 : i32
    %c0_i32_0 = arith.constant 0 : i32
    %c0_i32_1 = arith.constant 0 : i32
    return %c0_i32, %c0_i32_0 : i32, i32
  }
  func.func @transform_1(%arg0: i32) -> (i32, i32) {
    %c0_i32 = arith.constant 0 : i32
    %c0_i32_0 = arith.constant 0 : i32
    return %arg0, %c0_i32 : i32, i32
  }
  func.func @transform_2(%arg0: i32) -> (i32, i32) {
    %c0_i32 = arith.constant 0 : i32
    %c0_i32_0 = arith.constant 0 : i32
    return %arg0, %c0_i32 : i32, i32
  }
}

</mosaic_0001>

<bundles_post_ra>
// kernel: tpu_custom_call.1
= control target key start
LH: loop header
LB: loop body
LE: loop exit
PB: predicated region body
PF: predicated region fallthrough
CT: control target
= control target key end

     0   :  { %s2617_s9 = smov 0   ;;  %s4227_s0 = inlined_call_operand.vmem [shape: f32[3,96], index: 0, kind: input, shape index: {}]   ;;  %s4228_s1 = inlined_call_operand.vmem [shape: f32[256,4], index: 1, kind: input, shape index: {}]   ;;  %s4229_s2 = inlined_call_operand.vmem [shape: f32[256,96], index: 2, kind: output, shape index: {}]  }
   0x1 LB: > { %s2352_s10 = sadd.s32 4294967295, %s2589_s9   ;;  %p2356_p0 = scmp.ge.s32.totalorder %s2589_s9, 1  ;;  %s2589_s9 = sphi %s2617_s9, %s12_s9  }
   0x2   : > { %p113_p1 = scmp.lt.s32.totalorder %s2589_s9, 3 }
   0x4   : > { %p114_p2 = pnand %p2356_p0, %p113_p1 }
   0x5   : > { %s2357_s11 = sshll.u32 (!%p114_p2), %s2352_s10, 4  ;;  %s2591_s16 = smov (!%p114_p2), 4   ;;  %vm227_vm0 = vcmask (!%p114_p2), 31744   ;;  %vm308_vm1 = vcmask (!%p114_p2), 64512   ;;  %vm389_vm2 = vcmask (!%p114_p2), 130048   ;;  %vm470_vm3 = vcmask (!%p114_p2), 261120  }
   0x6   : > { %117 = sbr.rel (%p114_p2) target bundleno = 964 (0x3c4), region = 28  ;;  %p136_p3 = scmp.lt.s32.totalorder (!%p114_p2), %s2357_s11, 31  ;;  %vm535_vm4 = vcmask (!%p114_p2), 523264  }
   0x7   : > { %s2592_s17 = smov (!%p114_p2), 8   ;;  %s2593_s18 = smov (!%p114_p2), 16  }
   0x8   : > { %s2594_s19 = smov (!%p114_p2), 32   ;;  %s2595_s20 = smov (!%p114_p2), 64  }
   0xd   : > { %s4259_s11 = smov (!%p136_p3, %s2357_s11), 31 }
   0xe   : > { %s2358_s12 = sshll.u32 %s4259_s11, 3 }
   0xf   : > { %s2633_s15 = scalar_lea.vmem %s4228_s1, %s2358_s12  ;;  %s3099_s29 = scalar_lea.vmem %s4229_s2, %s2358_s12 }
  0x10   : > { %v147_v0 = vld [vmem:[%s2633_s15] sm:$0xff]  ;;  %v149_v1 = vld [vmem:[%s2633_s15 + $0x10] sm:$0xff]  ;;  %v148_v2 = vld [vmem:[%s2633_s15 + $0x8] sm:$0xff] }
  0x11   : > { %179 = vrot.lane.b32.xlu0 %v147_v0, %s2591_s16  ;;  %183 = vrot.lane.b32.xlu1 %v149_v1, %s2591_s16  ;;  %v150_v3 = vld [vmem:[%s2633_s15 + $0x18] sm:$0xff]  ;;  %v151_v4 = vld [vmem:[%s2633_s15 + $0x20] sm:$0xff] }
  0x12   : > { %v152_v5 = vld [vmem:[%s2633_s15 + $0x28] sm:$0xff]  ;;  %v153_v6 = vld [vmem:[%s2633_s15 + $0x30] sm:$0xff]  ;;  %v154_v7 = vld [vmem:[%s2633_s15 + $0x38] sm:$0xff] }
  0x13   : > { %v155_v8 = vld [vmem:[%s2633_s15 + $0x40] sm:$0xff]  ;;  %v156_v9 = vld [vmem:[%s2633_s15 + $0x48] sm:$0xff]  ;;  %v157_v10 = vld [vmem:[%s2633_s15 + $0x50] sm:$0xff] }
  0x14   : > { %v158_v11 = vld [vmem:[%s2633_s15 + $0x58] sm:$0xff]  ;;  %v159_v12 = vld [vmem:[%s2633_s15 + $0x60] sm:$0xff]  ;;  %v160_v13 = vld [vmem:[%s2633_s15 + $0x68] sm:$0xff] }
  0x15   : > { %181 = vrot.lane.b32.xlu0 %v148_v2, %s2591_s16  ;;  %185 = vrot.lane.b32.xlu1 %v150_v3, %s2591_s16  ;;  %v161_v14 = vld [vmem:[%s2633_s15 + $0x70] sm:$0xff]  ;;  %v162_v15 = vld [vmem:[%s2633_s15 + $0x78] sm:$0xff] }
  0x19   : > { %187 = vrot.lane.b32.xlu0 %v151_v4, %s2591_s16  ;;  %189 = vrot.lane.b32.xlu1 %v152_v5, %s2591_s16 }
  0x1d   : > { %191 = vrot.lane.b32.xlu0 %v153_v6, %s2591_s16  ;;  %193 = vrot.lane.b32.xlu1 %v154_v7, %s2591_s16 }
  0x21   : > { %195 = vrot.lane.b32.xlu0 %v155_v8, %s2591_s16  ;;  %197 = vrot.lane.b32.xlu1 %v156_v9, %s2591_s16 }
  0x25   : > { %199 = vrot.lane.b32.xlu0 %v157_v10, %s2591_s16  ;;  %201 = vrot.lane.b32.xlu1 %v158_v11, %s2591_s16 }
  0x29   : > { %203 = vrot.lane.b32.xlu0 %v159_v12, %s2591_s16  ;;  %205 = vrot.lane.b32.xlu1 %v160_v13, %s2591_s16 }
  0x2d   : > { %207 = vrot.lane.b32.xlu0 %v161_v14, %s2591_s16  ;;  %209 = vrot.lane.b32.xlu1 %v162_v15, %s2591_s16 }
  0x83   : > { %v180_v16 = vpop.permute.xlu0 %179  ;;  %v184_v17 = vpop.permute.xlu1 %183 }
  0x84   : > { %v228_v18 = vsel %vm227_vm0, %v147_v0, %v180_v16  ;;  %v230_v19 = vsel %vm227_vm0, %v149_v1, %v184_v17 }
  0x85   : > { %260 = vrot.lane.b32.xlu0 %v228_v18, %s2592_s17 }
  0x87   : > { %v182_v20 = vpop.permute.xlu0 %181  ;;  %v186_v21 = vpop.permute.xlu1 %185 }
  0x88   : > { %v229_v22 = vsel %vm227_vm0, %v148_v2, %v182_v20  ;;  %v231_v23 = vsel %vm227_vm0, %v150_v3, %v186_v21 }
  0x89   : > { %264 = vrot.lane.b32.xlu0 %v230_v19, %s2592_s17  ;;  %262 = vrot.lane.b32.xlu1 %v229_v22, %s2592_s17 }
  0x8b   : > { %v188_v24 = vpop.permute.xlu0 %187  ;;  %v190_v25 = vpop.permute.xlu1 %189 }
  0x8c   : > { %v232_v26 = vsel %vm227_vm0, %v151_v4, %v188_v24  ;;  %v233_v27 = vsel %vm227_vm0, %v152_v5, %v190_v25 }
  0x8d   : > { %266 = vrot.lane.b32.xlu1 %v231_v23, %s2592_s17  ;;  %268 = vrot.lane.b32.xlu0 %v232_v26, %s2592_s17 }
  0x8f   : > { %v192_v28 = vpop.permute.xlu0 %191  ;;  %v194_v29 = vpop.permute.xlu1 %193 }
  0x90   : > { %v234_v30 = vsel %vm227_vm0, %v153_v6, %v192_v28  ;;  %v235_v31 = vsel %vm227_vm0, %v154_v7, %v194_v29 }
  0x91   : > { %270 = vrot.lane.b32.xlu1 %v233_v27, %s2592_s17  ;;  %272 = vrot.lane.b32.xlu0 %v234_v30, %s2592_s17 }
  0x93   : > { %v196_v32 = vpop.permute.xlu0 %195  ;;  %v198_v33 = vpop.permute.xlu1 %197 }
  0x94   : > { %v236_v34 = vsel %vm227_vm0, %v155_v8, %v196_v32  ;;  %v237_v35 = vsel %vm227_vm0, %v156_v9, %v198_v33 }
  0x95   : > { %274 = vrot.lane.b32.xlu1 %v235_v31, %s2592_s17  ;;  %276 = vrot.lane.b32.xlu0 %v236_v34, %s2592_s17 }
  0x97   : > { %v200_v36 = vpop.permute.xlu0 %199  ;;  %v202_v37 = vpop.permute.xlu1 %201 }
  0x98   : > { %v238_v38 = vsel %vm227_vm0, %v157_v10, %v200_v36  ;;  %v239_v39 = vsel %vm227_vm0, %v158_v11, %v202_v37 }
  0x99   : > { %278 = vrot.lane.b32.xlu1 %v237_v35, %s2592_s17  ;;  %280 = vrot.lane.b32.xlu0 %v238_v38, %s2592_s17 }
  0x9b   : > { %v204_v40 = vpop.permute.xlu0 %203  ;;  %v206_v41 = vpop.permute.xlu1 %205 }
  0x9c   : > { %v240_v42 = vsel %vm227_vm0, %v159_v12, %v204_v40  ;;  %v241_v43 = vsel %vm227_vm0, %v160_v13, %v206_v41 }
  0x9d   : > { %282 = vrot.lane.b32.xlu1 %v239_v39, %s2592_s17  ;;  %284 = vrot.lane.b32.xlu0 %v240_v42, %s2592_s17 }
  0x9f   : > { %v208_v44 = vpop.permute.xlu0 %207  ;;  %v210_v45 = vpop.permute.xlu1 %209 }
  0xa0   : > { %v242_v46 = vsel %vm227_vm0, %v161_v14, %v208_v44  ;;  %v243_v47 = vsel %vm227_vm0, %v162_v15, %v210_v45 }
  0xa1   : > { %286 = vrot.lane.b32.xlu1 %v241_v43, %s2592_s17  ;;  %288 = vrot.lane.b32.xlu0 %v242_v46, %s2592_s17 }
  0xa5   : > { %290 = vrot.lane.b32.xlu1 %v243_v47, %s2592_s17 }
  0xf7   : > { %v261_v48 = vpop.permute.xlu0 %260 }
  0xf8   : > { %v309_v49 = vsel %vm308_vm1, %v228_v18, %v261_v48 }
  0xf9   : > { %341 = vrot.lane.b32.xlu0 %v309_v49, %s2593_s18 }
  0xfb   : > { %v263_v50 = vpop.permute.xlu1 %262  ;;  %v265_v51 = vpop.permute.xlu0 %264 }
  0xfc   : > { %v310_v52 = vsel %vm308_vm1, %v229_v22, %v263_v50  ;;  %v311_v53 = vsel %vm308_vm1, %v230_v19, %v265_v51 }
  0xfd   : > { %343 = vrot.lane.b32.xlu1 %v310_v52, %s2593_s18  ;;  %345 = vrot.lane.b32.xlu0 %v311_v53, %s2593_s18 }
  0xff   : > { %v267_v54 = vpop.permute.xlu1 %266  ;;  %v269_v55 = vpop.permute.xlu0 %268 }
 0x100   : > { %v312_v56 = vsel %vm308_vm1, %v231_v23, %v267_v54  ;;  %v313_v57 = vsel %vm308_vm1, %v232_v26, %v269_v55 }
 0x101   : > { %347 = vrot.lane.b32.xlu1 %v312_v56, %s2593_s18  ;;  %349 = vrot.lane.b32.xlu0 %v313_v57, %s2593_s18 }
 0x103   : > { %v271_v58 = vpop.permute.xlu1 %270  ;;  %v273_v59 = vpop.permute.xlu0 %272 }
 0x104   : > { %v314_v60 = vsel %vm308_vm1, %v233_v27, %v271_v58  ;;  %v315_v61 = vsel %vm308_vm1, %v234_v30, %v273_v59 }
 0x105   : > { %351 = vrot.lane.b32.xlu1 %v314_v60, %s2593_s18  ;;  %353 = vrot.lane.b32.xlu0 %v315_v61, %s2593_s18 }
 0x107   : > { %v275_v62 = vpop.permute.xlu1 %274  ;;  %v277_v63 = vpop.permute.xlu0 %276 }
 0x108   : > { %v316_v0 = vsel %vm308_vm1, %v235_v31, %v275_v62  ;;  %v317_v1 = vsel %vm308_vm1, %v236_v34, %v277_v63 }
 0x109   : > { %355 = vrot.lane.b32.xlu1 %v316_v0, %s2593_s18  ;;  %357 = vrot.lane.b32.xlu0 %v317_v1, %s2593_s18 }
 0x10b   : > { %v279_v2 = vpop.permute.xlu1 %278  ;;  %v281_v3 = vpop.permute.xlu0 %280 }
 0x10c   : > { %v318_v4 = vsel %vm308_vm1, %v237_v35, %v279_v2  ;;  %v319_v5 = vsel %vm308_vm1, %v238_v38, %v281_v3 }
 0x10d   : > { %359 = vrot.lane.b32.xlu1 %v318_v4, %s2593_s18  ;;  %361 = vrot.lane.b32.xlu0 %v319_v5, %s2593_s18 }
 0x10f   : > { %v283_v6 = vpop.permute.xlu1 %282  ;;  %v285_v7 = vpop.permute.xlu0 %284 }
 0x110   : > { %v320_v8 = vsel %vm308_vm1, %v239_v39, %v283_v6  ;;  %v321_v9 = vsel %vm308_vm1, %v240_v42, %v285_v7 }
 0x111   : > { %363 = vrot.lane.b32.xlu1 %v320_v8, %s2593_s18  ;;  %365 = vrot.lane.b32.xlu0 %v321_v9, %s2593_s18 }
 0x113   : > { %v287_v10 = vpop.permute.xlu1 %286  ;;  %v289_v11 = vpop.permute.xlu0 %288 }
 0x114   : > { %v322_v12 = vsel %vm308_vm1, %v241_v43, %v287_v10  ;;  %v323_v13 = vsel %vm308_vm1, %v242_v46, %v289_v11  ;;  %v2798_v11 = vld [vmem:[%s4227_s0] ss:$0 sm:$0xff] }
 0x115   : > { %367 = vrot.lane.b32.xlu1 %v322_v12, %s2593_s18  ;;  %369 = vrot.lane.b32.xlu0 %v323_v13, %s2593_s18 }
 0x117   : > { %v291_v14 = vpop.permute.xlu1 %290 }
 0x118   : > { %v324_v15 = vsel %vm308_vm1, %v243_v47, %v291_v14 }
 0x119   : > { %371 = vrot.lane.b32.xlu1 %v324_v15, %s2593_s18 }
 0x16b   : > { %v342_v16 = vpop.permute.xlu0 %341 }
 0x16c   : > { %v2716_v17 = vsel %vm389_vm2, %v309_v49, %v342_v16  ;;  %v2808_v16 = vld [vmem:[%s4227_s0 + $0x1] ss:$0 sm:$0xff] }
 0x16d   : > { %422 = vrot.lane.b32.xlu0 %v2716_v17, %s2594_s19 }
 0x16f   : > { %v344_v18 = vpop.permute.xlu1 %343  ;;  %v346_v19 = vpop.permute.xlu0 %345 }
 0x170   : > { %v2721_v20 = vsel %vm389_vm2, %v310_v52, %v344_v18  ;;  %v2724_v21 = vsel %vm389_vm2, %v311_v53, %v346_v19 }
 0x171   : > { %424 = vrot.lane.b32.xlu1 %v2721_v20, %s2594_s19  ;;  %426 = vrot.lane.b32.xlu0 %v2724_v21, %s2594_s19 }
 0x173   : > { %v348_v22 = vpop.permute.xlu1 %347  ;;  %v350_v23 = vpop.permute.xlu0 %349 }
 0x174   : > { %v393_v24 = vsel %vm389_vm2, %v312_v56, %v348_v22  ;;  %v394_v25 = vsel %vm389_vm2, %v313_v57, %v350_v23 }
 0x175   : > { %428 = vrot.lane.b32.xlu1 %v393_v24, %s2594_s19  ;;  %430 = vrot.lane.b32.xlu0 %v394_v25, %s2594_s19 }
 0x177   : > { %v352_v26 = vpop.permute.xlu1 %351  ;;  %v354_v27 = vpop.permute.xlu0 %353 }
 0x178   : > { %v395_v28 = vsel %vm389_vm2, %v314_v60, %v352_v26  ;;  %v396_v29 = vsel %vm389_vm2, %v315_v61, %v354_v27 }
 0x179   : > { %432 = vrot.lane.b32.xlu1 %v395_v28, %s2594_s19  ;;  %434 = vrot.lane.b32.xlu0 %v396_v29, %s2594_s19 }
 0x17b   : > { %v356_v30 = vpop.permute.xlu1 %355  ;;  %v358_v31 = vpop.permute.xlu0 %357 }
 0x17c   : > { %v397_v32 = vsel %vm389_vm2, %v316_v0, %v356_v30  ;;  %v398_v33 = vsel %vm389_vm2, %v317_v1, %v358_v31 }
 0x17d   : > { %436 = vrot.lane.b32.xlu1 %v397_v32, %s2594_s19  ;;  %438 = vrot.lane.b32.xlu0 %v398_v33, %s2594_s19 }
 0x17f   : > { %v360_v34 = vpop.permute.xlu1 %359  ;;  %v362_v35 = vpop.permute.xlu0 %361 }
 0x180   : > { %v399_v36 = vsel %vm389_vm2, %v318_v4, %v360_v34  ;;  %v400_v37 = vsel %vm389_vm2, %v319_v5, %v362_v35 }
 0x181   : > { %440 = vrot.lane.b32.xlu1 %v399_v36, %s2594_s19  ;;  %442 = vrot.lane.b32.xlu0 %v400_v37, %s2594_s19 }
 0x183   : > { %v364_v38 = vpop.permute.xlu1 %363  ;;  %v366_v39 = vpop.permute.xlu0 %365 }
 0x184   : > { %v401_v40 = vsel %vm389_vm2, %v320_v8, %v364_v38  ;;  %v402_v41 = vsel %vm389_vm2, %v321_v9, %v366_v39 }
 0x185   : > { %444 = vrot.lane.b32.xlu1 %v401_v40, %s2594_s19  ;;  %446 = vrot.lane.b32.xlu0 %v402_v41, %s2594_s19 }
 0x187   : > { %v368_v42 = vpop.permute.xlu1 %367  ;;  %v370_v43 = vpop.permute.xlu0 %369 }
 0x188   : > { %v403_v44 = vsel %vm389_vm2, %v322_v12, %v368_v42  ;;  %v404_v45 = vsel %vm389_vm2, %v323_v13, %v370_v43 }
 0x189   : > { %448 = vrot.lane.b32.xlu1 %v403_v44, %s2594_s19  ;;  %450 = vrot.lane.b32.xlu0 %v404_v45, %s2594_s19 }
 0x18b   : > { %v372_v46 = vpop.permute.xlu1 %371 }
 0x18c   : > { %v405_v47 = vsel %vm389_vm2, %v324_v15, %v372_v46 }
 0x18d   : > { %452 = vrot.lane.b32.xlu1 %v405_v47, %s2594_s19  ;;  %487 = vrot.lane.b32.xlu0 %v2716_v17, %s2595_s20 }
 0x191   : > { %489 = vrot.lane.b32.xlu1 %v2721_v20, %s2595_s20  ;;  %491 = vrot.lane.b32.xlu0 %v2724_v21, %s2595_s20 }
 0x195   : > { %493 = vrot.lane.b32.xlu1 %v393_v24, %s2595_s20  ;;  %495 = vrot.lane.b32.xlu0 %v394_v25, %s2595_s20 }
 0x199   : > { %497 = vrot.lane.b32.xlu1 %v395_v28, %s2595_s20  ;;  %499 = vrot.lane.b32.xlu0 %v396_v29, %s2595_s20 }
 0x19d   : > { %501 = vrot.lane.b32.xlu1 %v397_v32, %s2595_s20  ;;  %503 = vrot.lane.b32.xlu0 %v398_v33, %s2595_s20 }
 0x1a1   : > { %505 = vrot.lane.b32.xlu1 %v399_v36, %s2595_s20  ;;  %507 = vrot.lane.b32.xlu0 %v400_v37, %s2595_s20 }
 0x1a5   : > { %509 = vrot.lane.b32.xlu1 %v401_v40, %s2595_s20  ;;  %511 = vrot.lane.b32.xlu0 %v402_v41, %s2595_s20 }
 0x1a9   : > { %513 = vrot.lane.b32.xlu1 %v403_v44, %s2595_s20  ;;  %515 = vrot.lane.b32.xlu0 %v404_v45, %s2595_s20 }
 0x1ad   : > { %517 = vrot.lane.b32.xlu1 %v405_v47, %s2595_s20 }
 0x1df   : > { %v423_v48 = vpop.permute.xlu0 %422 }
 0x1e0   : > { %v471_v12 = vsel %vm470_vm3, %v2716_v17, %v423_v48 }
 0x1e3   : > { %v425_v49 = vpop.permute.xlu1 %424  ;;  %v427_v50 = vpop.permute.xlu0 %426 }
 0x1e4   : > { %v472_v22 = vsel %vm470_vm3, %v2721_v20, %v425_v49  ;;  %v473_v17 = vsel %vm470_vm3, %v2724_v21, %v427_v50 }
 0x1e7   : > { %v429_v51 = vpop.permute.xlu1 %428  ;;  %v431_v52 = vpop.permute.xlu0 %430 }
 0x1e8   : > { %v2760_v53 = vsel %vm470_vm3, %v393_v24, %v429_v51  ;;  %v2763_v54 = vsel %vm470_vm3, %v394_v25, %v431_v52 }
 0x1eb   : > { %v433_v55 = vpop.permute.xlu1 %432  ;;  %v435_v56 = vpop.permute.xlu0 %434 }
 0x1ec   : > { %v2766_v57 = vsel %vm470_vm3, %v395_v28, %v433_v55  ;;  %v2769_v58 = vsel %vm470_vm3, %v396_v29, %v435_v56  ;;  %v2596_v55 = vmov 683565275  }
 0x1ef   : > { %v437_v59 = vpop.permute.xlu1 %436  ;;  %v439_v60 = vpop.permute.xlu0 %438 }
 0x1f0   : > { %v2772_v61 = vsel %vm470_vm3, %v397_v32, %v437_v59  ;;  %v2775_v62 = vsel %vm470_vm3, %v398_v33, %v439_v60  ;;  %v2597_v59 = vmov 2475754826  }
 0x1f3   : > { %v441_v63 = vpop.permute.xlu1 %440  ;;  %v443_v0 = vpop.permute.xlu0 %442 }
 0x1f4   : > { %v2778_v1 = vsel %vm470_vm3, %v399_v36, %v441_v63  ;;  %v2781_v2 = vsel %vm470_vm3, %v400_v37, %v443_v0  ;;  %v2598_v0 = vmov 2131351028  }
 0x1f7   : > { %v445_v3 = vpop.permute.xlu1 %444  ;;  %v447_v4 = vpop.permute.xlu0 %446 }
 0x1f8   : > { %v2784_v5 = vsel %vm470_vm3, %v401_v40, %v445_v3  ;;  %v2787_v6 = vsel %vm470_vm3, %v402_v41, %v447_v4  ;;  %v2599_v4 = vmov 2102212464  }
 0x1fb   : > { %v449_v7 = vpop.permute.xlu1 %448  ;;  %v451_v8 = vpop.permute.xlu0 %450 }
 0x1fc   : > { %v2790_v9 = vsel %vm470_vm3, %v403_v44, %v449_v7  ;;  %v2793_v10 = vsel %vm470_vm3, %v404_v45, %v451_v8  ;;  %v2600_v8 = vmov 920167782  }
 0x1ff   : > { %v453_v13 = vpop.permute.xlu1 %452  ;;  %v488_v14 = vpop.permute.xlu0 %487 }
 0x200   : > { %v2803_v15 = vsel %vm470_vm3, %v405_v47, %v453_v13  ;;  %v536_v18 = vsel %vm535_vm4, %v471_v12, %v488_v14 }
 0x201   : > { %v559_v19 = vmul.f32 %v2798_v11, %v536_v18 }
 0x203   : > { %v2817_v23 = vadd.f32 %v2808_v16, %v559_v19  ;;  %v490_v24 = vpop.permute.xlu1 %489  ;;  %v492_v25 = vpop.permute.xlu0 %491 }
 0x204   : > { %v537_v26 = vsel %vm535_vm4, %v472_v22, %v490_v24  ;;  %v538_v27 = vsel %vm535_vm4, %v473_v17, %v492_v25  ;;  %v2601_v22 = vmov 1326507024  }
 0x205   : > { %v595_v28 = vand.u32 2147483647, %v2817_v23  ;;  %v598_v29 = vand.u32 2139095040, %v2817_v23  ;;  %v560_v30 = vmul.f32 %v2798_v11, %v537_v26  ;;  %v561_v20 = vmul.f32 %v2798_v11, %v538_v27 }
 0x206   : > { %vm597_vm2 = vcmp.lt.s32.totalorder %v2817_v23, 0 }
 0x207   : > { %v599_v31 = vshrl.u32 %v598_v29, 23  ;;  %v602_v21 = vand.u32 8388607, %v595_v28  ;;  %v2828_v32 = vadd.f32 %v2808_v16, %v560_v30  ;;  %v2831_v33 = vadd.f32 %v2808_v16, %v561_v20  ;;  %v494_v42 = vpop.permute.xlu1 %493 }
 0x208   : > { %v2842_v51 = vsel %vm535_vm4, %v2760_v53, %v494_v42 }
 0x209   : > { %v2363_v34 = vadd.s32 4294967169, %v599_v31  ;;  %v699_v35 = vand.u32 2147483647, %v2828_v32  ;;  %v702_v36 = vand.u32 2139095040, %v2828_v32  ;;  %v603_v38 = vor.u32 8388608, %v602_v21 }
 0x20a   : > { %v806_v41 = vand.u32 2139095040, %v2831_v33 }
 0x20b   : > { %v605_v37 = vadd.s32 1, %v2363_v34  ;;  %v703_v39 = vshrl.u32 %v702_v36, 23  ;;  %v706_v40 = vand.u32 8388607, %v699_v35  ;;  %v2838_v48 = vshll.u32 %v603_v38, 8 }
 0x20c   : > { %v807_v45 = vshrl.u32 %v806_v41, 23 }
 0x20d   : > { %vm606_vm5 = vcmp.gt.s32.totalorder %v605_v37, 0  ;;  %v2367_v44 = vadd.s32 4294967169, %v703_v39  ;;  %v707_v49 = vor.u32 8388608, %v706_v40 }
 0x20e   : > { %v607_v43 = vsel %vm606_vm5, %v605_v37, 0  ;;  %v2371_v63 = vadd.s32 4294967169, %v807_v45  ;;  %vm2948_vm5 = vcmp.le.f32.partialorder %v595_v28, 0.7853982 }
 0x20f   : > { %v608_v46 = vshrl.u32 %v607_v43, 5  ;;  %v609_v47 = vand.u32 31, %v607_v43  ;;  %v709_v50 = vadd.s32 1, %v2367_v44 }
 0x211   : > { %v610_v52 = vsub.s32 32, %v609_v47  ;;  %v612_v56 = vshll.u32 %v2596_v55, %v609_v47  ;;  %v615_v60 = vshll.u32 %v2597_v59, %v609_v47  ;;  %v618_v3 = vshll.u32 %v2598_v0, %v609_v47 }
 0x212   : > { %v621_v7 = vshll.u32 %v2599_v4, %v609_v47  ;;  %v624_v12 = vshll.u32 %v2600_v8, %v609_v47  ;;  %vm627_vm6 = vcmp.lt.s32.totalorder %v608_v46, 1  ;;  %vm628_vm7 = vcmp.lt.s32.totalorder %v608_v46, 2 }
 0x213   : > { %v613_v53 = vshrl.u32 %v2597_v59, %v610_v52  ;;  %v616_v13 = vshrl.u32 %v2598_v0, %v610_v52  ;;  %v619_v14 = vshrl.u32 %v2599_v4, %v610_v52  ;;  %v611_v18 = vshrl.u32 %v2596_v55, %v610_v52 }
 0x214   : > { %v622_v19 = vshrl.u32 %v2600_v8, %v610_v52  ;;  %v625_v17 = vshrl.u32 %v2601_v22, %v610_v52  ;;  %vm629_vm8 = vcmp.lt.s32.totalorder %v608_v46, 3  ;;  %vm710_vm9 = vcmp.gt.s32.totalorder %v709_v50, 0 }
 0x215   : > { %v614_v24 = vor.u32 %v613_v53, %v612_v56  ;;  %v617_v25 = vor.u32 %v616_v13, %v615_v60  ;;  %v620_v26 = vor.u32 %v619_v14, %v618_v3  ;;  %vm630_vm10 = vcmp.lt.s32.totalorder %v608_v46, 4 }
 0x216   : > { %v623_v27 = vor.u32 %v622_v19, %v621_v7  ;;  %v626_v29 = vor.u32 %v625_v17, %v624_v12  ;;  %v711_v30 = vsel %vm710_vm9, %v709_v50, 0  ;;  %v2864_v47 = vshll.u32 %v707_v49, 8 }
 0x217   : > { %v631_v20 = vsel %vm627_vm6, %v611_v18, %v614_v24  ;;  %v632_v31 = vsel %vm630_vm10, %v620_v26, 2102212464  ;;  %v635_v21 = vsel %vm627_vm6, %v614_v24, %v617_v25  ;;  %v639_v34 = vsel %vm627_vm6, %v617_v25, %v620_v26 }
 0x218   : > { %v633_v36 = vsel %vm629_vm8, %v617_v25, %v632_v31  ;;  %v636_v37 = vsel %vm630_vm10, %v623_v27, 920167782  ;;  %v640_v38 = vsel %vm630_vm10, %v626_v29, 1326507024  ;;  %v712_v39 = vshrl.u32 %v711_v30, 5 }
 0x219   : > { %v634_v40 = vsel %vm628_vm7, %v631_v20, %v633_v36  ;;  %v637_v41 = vsel %vm629_vm8, %v620_v26, %v636_v37  ;;  %v641_v42 = vsel %vm629_vm8, %v623_v27, %v640_v38  ;;  %v713_v43 = vand.u32 31, %v711_v30 }
 0x21a   : > { %v638_v44 = vsel %vm628_vm7, %v635_v21, %v637_v41  ;;  %v642_v45 = vsel %vm628_vm7, %v639_v34, %v641_v42  ;;  %v803_v50 = vand.u32 2147483647, %v2831_v33  ;;  %v650_v7 = vmul.u32 %v2838_v48, %v634_v40 }
 0x21b   : > { %v2868_v52 = vmul.u32.u64.low %v2838_v48, %v642_v45  ;;  %v2869_v56 = vmul.u32.u64.high %v2838_v48, %v642_v45, %v2868_v52  ;;  %v2872_v60 = vmul.u32.u64.low %v2838_v48, %v638_v44  ;;  %v2873_v3 = vmul.u32.u64.high %v2838_v48, %v638_v44, %v2872_v60 }
 0x21c   : > { %v714_v12 = vsub.s32 32, %v713_v43  ;;  %vm731_vm11 = vcmp.lt.s32.totalorder %v712_v39, 1  ;;  %v813_v53 = vadd.s32 1, %v2371_v63  ;;  %v716_v46 = vshll.u32 %v2596_v55, %v713_v43 }
 0x21d   : > { %v719_v49 = vshll.u32 %v2597_v59, %v713_v43  ;;  %v722_v13 = vshll.u32 %v2598_v0, %v713_v43  ;;  %v725_v14 = vshll.u32 %v2599_v4, %v713_v43  ;;  %v728_v24 = vshll.u32 %v2600_v8, %v713_v43 }
 0x21e   : > { %v717_v18 = vshrl.u32 %v2597_v59, %v714_v12  ;;  %v720_v19 = vshrl.u32 %v2598_v0, %v714_v12  ;;  %v723_v17 = vshrl.u32 %v2599_v4, %v714_v12  ;;  %vm652_vm12 = vc.u32 %v2869_v56, %v2872_v60 }
 0x21f   : > { %v653_v48 = vadd.s32 1, %v2873_v3  ;;  %v726_v63 = vshrl.u32 %v2600_v8, %v714_v12  ;;  %vm732_vm13 = vcmp.lt.s32.totalorder %v712_v39, 2  ;;  %v729_v29 = vshrl.u32 %v2601_v22, %v714_v12 }
 0x220   : > { %v718_v25 = vor.u32 %v717_v18, %v716_v46  ;;  %v721_v26 = vor.u32 %v720_v19, %v719_v49  ;;  %v724_v27 = vor.u32 %v723_v17, %v722_v13  ;;  %v715_v20 = vshrl.u32 %v2596_v55, %v714_v12 }
 0x221   : > { %v654_v30 = vsel %vm652_vm12, %v653_v48, %v2873_v3  ;;  %v727_v31 = vor.u32 %v726_v63, %v725_v14  ;;  %vm734_vm14 = vcmp.lt.s32.totalorder %v712_v39, 4  ;;  %v730_v34 = vor.u32 %v729_v29, %v728_v24  ;;  %v496_v14 = vpop.permute.xlu0 %495 }
 0x222   : > { %v655_v21 = vadd.s32 %v654_v30, %v650_v7  ;;  %v736_v36 = vsel %vm734_vm14, %v724_v27, 2102212464  ;;  %vm814_vm15 = vcmp.gt.s32.totalorder %v813_v53, 0  ;;  %vm733_vm0 = vcmp.lt.s32.totalorder %v712_v39, 3 }
 0x223   : > { %v739_v37 = vsel %vm731_vm11, %v718_v25, %v721_v26  ;;  %v740_v38 = vsel %vm734_vm14, %v727_v31, 920167782  ;;  %v743_v40 = vsel %vm731_vm11, %v721_v26, %v724_v27  ;;  %v735_v42 = vsel %vm731_vm11, %v715_v20, %v718_v25 }
 0x224   : > { %v656_v41 = vadd.s32 536870912, %v655_v21  ;;  %v741_v43 = vsel %vm733_vm0, %v724_v27, %v740_v38  ;;  %v744_v44 = vsel %vm734_vm14, %v730_v34, 1326507024  ;;  %v737_v45 = vsel %vm733_vm0, %v721_v26, %v736_v36 }
 0x225   : > { %v742_v52 = vsel %vm732_vm13, %v739_v37, %v741_v43  ;;  %v745_v3 = vsel %vm733_vm0, %v727_v31, %v744_v44  ;;  %v815_v12 = vsel %vm814_vm15, %v813_v53, 0  ;;  %v738_v48 = vsel %vm732_vm13, %v735_v42, %v737_v45 }
 0x226   : > { %v657_v7 = vshrl.u32 %v656_v41, 30  ;;  %v746_v46 = vsel %vm732_vm13, %v743_v40, %v745_v3  ;;  %v2898_v49 = vmul.u32.u64.low %v2864_v47, %v742_v52  ;;  %v2899_v13 = vmul.u32.u64.high %v2864_v47, %v742_v52, %v2898_v49 }
 0x227   : > { %v2903_v18 = vmul.u32.u64.low %v2864_v47, %v746_v46  ;;  %v2904_v19 = vmul.u32.u64.high %v2864_v47, %v746_v46, %v2903_v18  ;;  %v817_v17 = vand.u32 31, %v815_v12  ;;  %v810_v53 = vand.u32 8388607, %v803_v50 }
 0x228   : > { %v658_v24 = vshll.u32 %v657_v7, 30  ;;  %v562_v25 = vmul.f32 %v2798_v11, %v2842_v51  ;;  %v540_v26 = vsel %vm535_vm4, %v2763_v54, %v496_v14  ;;  %v757_v29 = vadd.s32 1, %v2899_v13 }
 0x229   : > { %v818_v63 = vsub.s32 32, %v817_v17  ;;  %v754_v30 = vmul.u32 %v2864_v47, %v738_v48  ;;  %vm756_vm1 = vc.u32 %v2904_v19, %v2898_v49  ;;  %v2923_v51 = vmul.f32 %v2798_v11, %v540_v26 }
 0x22a   : > { %v2913_v27 = vsub.s32 %v655_v21, %v658_v24  ;;  %v758_v20 = vsel %vm756_vm1, %v757_v29, %v2899_v13  ;;  %v811_v54 = vor.u32 8388608, %v810_v53  ;;  %v2927_v34 = vadd.f32 %v2808_v16, %v562_v25 }
 0x22b   : > { %v759_v31 = vadd.s32 %v758_v20, %v754_v30  ;;  %v830_v21 = vshrl.u32 %v2600_v8, %v818_v63  ;;  %v651_v47 = vadd.s32 %v2872_v60, %v2869_v56  ;;  %v821_v37 = vshrl.u32 %v2597_v59, %v818_v63 }
 0x22c   : > { %v661_v39 = vsub.s32 0, %v2913_v27  ;;  %v829_v38 = vshll.u32 %v2599_v4, %v817_v17  ;;  %v2934_v41 = vshrl.u32 %v815_v12, 5  ;;  %v824_v42 = vshrl.u32 %v2598_v0, %v818_v63 }
 0x22d   : > { %v760_v40 = vadd.s32 536870912, %v759_v31  ;;  %v827_v43 = vshrl.u32 %v2599_v4, %v818_v63  ;;  %v681_v45 = vsub.s32 4, %v657_v7  ;;  %v820_v52 = vshll.u32 %v2596_v55, %v817_v17 }
 0x22e   : > { %v2364_v36 = vmin.u32 %v661_v39, %v2913_v27  ;;  %v831_v3 = vor.u32 %v830_v21, %v829_v38  ;;  %v823_v56 = vshll.u32 %v2597_v59, %v817_v17  ;;  %v826_v60 = vshll.u32 %v2598_v0, %v817_v17 }
 0x22f   : > { %v761_v46 = vshrl.u32 %v760_v40, 30  ;;  %v833_v13 = vshrl.u32 %v2601_v22, %v818_v63  ;;  %v822_v18 = vor.u32 %v821_v37, %v820_v52  ;;  %v832_v12 = vshll.u32 %v2600_v8, %v817_v17 }
 0x230   : > { %v663_v44 = vclz %v2364_v36  ;;  %v2943_v24 = vshll.u32 %v811_v54, 8  ;;  %v825_v53 = vor.u32 %v824_v42, %v823_v56  ;;  %v828_v25 = vor.u32 %v827_v43, %v826_v60 }
 0x231   : > { %v762_v48 = vshll.u32 %v761_v46, 30  ;;  %vm838_vm3 = vcmp.lt.s32.totalorder %v2934_v41, 4  ;;  %v682_v29 = vsel %vm597_vm2, %v681_v45, %v657_v7  ;;  %v834_v30 = vor.u32 %v833_v13, %v832_v12 }
 0x232   : > { %v2365_v14 = vadd.s32 4294967294, %v663_v44  ;;  %v844_v17 = vsel %vm838_vm3, %v831_v3, 920167782  ;;  %vm701_vm7 = vcmp.lt.s32.totalorder %v2828_v32, 0  ;;  %v819_v54 = vshrl.u32 %v2596_v55, %v818_v63 }
 0x233   : > { %v2957_v20 = vsub.s32 %v759_v31, %v762_v48  ;;  %vm835_vm8 = vcmp.lt.s32.totalorder %v2934_v41, 1  ;;  %vm836_vm9 = vcmp.lt.s32.totalorder %v2934_v41, 2  ;;  %vm837_vm10 = vcmp.lt.s32.totalorder %v2934_v41, 3 }
 0x234   : > { %vm2366_vm6 = vcmp.lt.s32.totalorder %v2365_v14, 0  ;;  %v843_v36 = vsel %vm835_vm8, %v822_v18, %v825_v53  ;;  %v845_v37 = vsel %vm837_vm10, %v828_v25, %v844_v17  ;;  %v847_v31 = vsel %vm835_vm8, %v825_v53, %v828_v25 }
 0x235   : > { %v666_v39 = vsel %vm2366_vm6, 0, %v2365_v14  ;;  %v765_v7 = vsub.s32 0, %v2957_v20  ;;  %vm2973_vm11 = vcmp.le.f32.partialorder %v699_v35, 0.7853982  ;;  %v848_v43 = vsel %vm838_vm3, %v834_v30, 1326507024 }
 0x236   : > { %v667_v28 = vsub.s32 32, %v666_v39  ;;  %v671_v21 = vsub.s32 4294967266, %v666_v39  ;;  %v668_v63 = vshll.u32 %v2913_v27, %v666_v39  ;;  %v785_v45 = vsub.s32 4, %v761_v46 }
 0x237   : > { %v2368_v44 = vmin.u32 %v765_v7, %v2957_v20  ;;  %v840_v52 = vsel %vm838_vm3, %v828_v25, 2102212464  ;;  %v849_v27 = vsel %vm837_vm10, %v831_v3, %v848_v43  ;;  %v846_v35 = vsel %vm836_vm9, %v843_v36, %v845_v37 }
 0x238   : > { %v669_v38 = vshrl.u32 %v651_v47, %v667_v28  ;;  %v672_v40 = vadd.s32 127, %v671_v21  ;;  %v850_v60 = vsel %vm836_vm9, %v847_v31, %v849_v27  ;;  %v839_v14 = vsel %vm835_vm8, %v819_v54, %v822_v18 }
 0x239   : > { %v767_v13 = vclz %v2368_v44  ;;  %v907_v12 = vand.u32 2147483647, %v2927_v34  ;;  %v2993_v48 = vadd.f32 %v2808_v16, %v2923_v51  ;;  %v841_v3 = vsel %vm837_vm10, %v825_v53, %v840_v52 }
 0x23a   : > { %v670_v47 = vor.u32 %v669_v38, %v668_v63  ;;  %v673_v56 = vshll.u32 %v672_v40, 23  ;;  %v2998_v30 = vmul.u32.u64.low %v2943_v24, %v850_v60  ;;  %v2999_v17 = vmul.u32.u64.high %v2943_v24, %v850_v60, %v2998_v30 }
 0x23b   : > { %v684_v39 = vsel %vm2948_vm5, 0, %v682_v29  ;;  %v2369_v28 = vadd.s32 4294967294, %v767_v13  ;;  %v3004_v18 = vmul.u32.u64.low %v2943_v24, %v846_v35  ;;  %v3005_v54 = vmul.u32.u64.high %v2943_v24, %v846_v35, %v3004_v18 }
 0x23c   : > { %v674_v25 = vor.u32 4788187, %v673_v56  ;;  %v677_v51 = vcvt.s32.f32 %v670_v47  ;;  %v786_v7 = vsel %vm701_vm7, %v785_v45, %v761_v46  ;;  %v910_v53 = vand.u32 2139095040, %v2927_v34 }
 0x23d   : > { %v755_v36 = vadd.s32 %v2898_v49, %v2904_v19  ;;  %vm2370_vm12 = vcmp.lt.s32.totalorder %v2369_v28, 0  ;;  %v842_v29 = vsel %vm836_vm9, %v839_v14, %v841_v3  ;;  %v1014_v37 = vand.u32 2139095040, %v2993_v48 }
 0x23e   : > { %v675_v21 = vand.u32 2147483647, %v674_v25  ;;  %v688_v63 = vadd.s32 3, %v684_v39  ;;  %v770_v38 = vsel %vm2370_vm12, 0, %v2369_v28  ;;  %vm860_vm13 = vc.u32 %v2999_v17, %v3004_v18 }
 0x23f   : > { %v771_v40 = vsub.s32 32, %v770_v38  ;;  %v775_v43 = vsub.s32 4294967266, %v770_v38  ;;  %v788_v46 = vsel %vm2973_vm11, 0, %v786_v7  ;;  %v861_v44 = vadd.s32 1, %v3005_v54 }
 0x240   : > { %v678_v31 = vmul.f32 %v677_v51, %v675_v21  ;;  %v772_v19 = vshll.u32 %v2957_v20, %v770_v38  ;;  %v858_v41 = vmul.u32 %v2943_v24, %v842_v29  ;;  %v911_v45 = vshrl.u32 %v910_v53, 23 }
 0x241   : > { %v773_v52 = vshrl.u32 %v755_v36, %v771_v40  ;;  %v776_v27 = vadd.s32 127, %v775_v43  ;;  %v862_v47 = vsel %vm860_vm13, %v861_v44, %v3005_v54  ;;  %v1015_v56 = vshrl.u32 %v1014_v37, 23 }
 0x242   : > { %v679_v49 = vxor.u32 2147483648, %v678_v31  ;;  %v863_v60 = vadd.s32 %v862_v47, %v858_v41  ;;  %v2375_v13 = vadd.s32 4294967169, %v911_v45  ;;  %v914_v14 = vand.u32 8388607, %v907_v12 }
 0x243   : > { %v774_v25 = vor.u32 %v773_v52, %v772_v19  ;;  %v777_v24 = vshll.u32 %v776_v27, 23  ;;  %v2379_v3 = vadd.s32 4294967169, %v1015_v56  ;;  %v1011_v28 = vand.u32 2147483647, %v2993_v48 }
 0x244   : > { %v680_v35 = vsel %vm597_vm2, %v679_v49, %v678_v31  ;;  %v864_v30 = vadd.s32 536870912, %v863_v60  ;;  %v917_v39 = vadd.s32 1, %v2375_v13  ;;  %v3032_v54 = vand.u32 3, %v688_v63  ;;  %v498_v31 = vpop.permute.xlu1 %497 }
 0x245   : > { %v683_v20 = vsel %vm2948_vm5, %v2817_v23, %v680_v35  ;;  %v778_v21 = vor.u32 4788187, %v777_v24  ;;  %v1021_v51 = vadd.s32 1, %v2379_v3  ;;  %v792_v7 = vadd.s32 3, %v788_v46 }
 0x246   : > { %2513 = vcosq.f32 %v683_v20  ;;  %v865_v53 = vshrl.u32 %v864_v30, 30  ;;  %vm918_vm14 = vcmp.gt.s32.totalorder %v917_v39, 0  ;;  %v781_v29 = vcvt.s32.f32 %v774_v25 }
 0x247   : > { %2515 = vsinq.f32 %v683_v20  ;;  %v779_v36 = vand.u32 2147483647, %v778_v21  ;;  %v915_v26 = vor.u32 8388608, %v914_v14  ;;  %v919_v37 = vsel %vm918_vm14, %v917_v39, 0 }
 0x248   : > { %vm805_vm15 = vcmp.lt.s32.totalorder %v2831_v33, 0  ;;  %v866_v38 = vshll.u32 %v865_v53, 30  ;;  %v921_v40 = vand.u32 31, %v919_v37  ;;  %v3037_v43 = vand.u32 8388607, %v1011_v28 }
 0x249   : > { %vm691_vm0 = vcmp.eq.s32.totalorder %v3032_v54, 0  ;;  %v782_v63 = vmul.f32 %v781_v29, %v779_v36  ;;  %v889_v44 = vsub.s32 4, %v865_v53  ;;  %vm1022_vm1 = vcmp.gt.s32.totalorder %v1021_v51, 0 }
 0x24a   : > { %vm690_vm2 = vcmp.lt.s32.totalorder %v3032_v54, 2  ;;  %vm694_vm3 = vcmp.eq.s32.totalorder %v3032_v54, 2  ;;  %v3042_v46 = vsub.s32 %v863_v60, %v866_v38  ;;  %v922_v49 = vsub.s32 32, %v921_v40 }
 0x24b   : > { %v541_v19 = vsel %vm535_vm4, %v2766_v57, %v498_v31  ;;  %vm687_vm5 = vweird.f32 %v2817_v23  ;;  %v783_v41 = vxor.u32 2147483648, %v782_v63  ;;  %v3047_v45 = vand.u32 3, %v792_v7  ;;  %v3085_v31 = vld [vmem:[%s4227_s0 + $0x2] ss:$0 sm:$0xff] }
 0x24c   : > { %v859_v52 = vadd.s32 %v3004_v18, %v2999_v17  ;;  %v3051_v27 = vshll.u32 %v915_v26, 8  ;;  %vm2279_vm6 = vcmask 785408   ;;  %v869_v47 = vsub.s32 0, %v3042_v46 }
 0x24d   : > { %v3054_v56 = vshrl.u32 %v919_v37, 5  ;;  %v1019_v35 = vor.u32 8388608, %v3037_v43  ;;  %v3057_v60 = vsel %vm1022_vm1, %v1021_v51, 0  ;;  %v784_v57 = vsel %vm701_vm7, %v783_v41, %v782_v63 }
 0x24e   : > { %v3063_v13 = vsel %vm805_vm15, %v889_v44, %v865_v53  ;;  %v925_v17 = vshrl.u32 %v2597_v59, %v922_v49  ;;  %v3067_v18 = vmul.f32 %v2798_v11, %v541_v19  ;;  %v787_v20 = vsel %vm2973_vm11, %v2828_v32, %v784_v57 }
 0x24f   : > { %v2372_v25 = vmin.u32 %v869_v47, %v3042_v46  ;;  %v924_v24 = vshll.u32 %v2596_v55, %v921_v40  ;;  %v931_v3 = vshrl.u32 %v2599_v4, %v922_v49  ;;  %2517 = vcosq.f32 %v787_v20 }
 0x250   : > { %v2514_v14 = vpop.eup %2513  ;;  %v927_v21 = vshll.u32 %v2597_v59, %v921_v40  ;;  %v928_v51 = vshrl.u32 %v2598_v0, %v922_v49  ;;  %2519 = vsinq.f32 %v787_v20  ;;  %v930_v42 = vshll.u32 %v2598_v0, %v921_v40 }
 0x251   : > { %v2516_v30 = vpop.eup %2515  ;;  %v695_v39 = vxor.u32 2147483648, %v2514_v14  ;;  %v871_v53 = vclz %v2372_v25  ;;  %v926_v29 = vor.u32 %v925_v17, %v924_v24  ;;  %v933_v26 = vshll.u32 %v2599_v4, %v921_v40 }
 0x252   : > { %v692_v7 = vxor.u32 2147483648, %v2516_v30  ;;  %v934_v37 = vshrl.u32 %v2600_v8, %v922_v49  ;;  %v932_v44 = vor.u32 %v931_v3, %v930_v42  ;;  %v937_v19 = vshrl.u32 %v2601_v22, %v922_v49 }
 0x253   : > { %v696_v36 = vsel %vm694_vm3, %v695_v39, %v2516_v30  ;;  %v2373_v63 = vadd.s32 4294967294, %v871_v53  ;;  %vm798_vm7 = vcmp.eq.s32.totalorder %v3047_v45, 2  ;;  %v929_v47 = vor.u32 %v928_v51, %v927_v21 }
 0x254   : > { %v693_v38 = vsel %vm691_vm0, %v2514_v14, %v692_v7  ;;  %v935_v57 = vor.u32 %v934_v37, %v933_v26  ;;  %v936_v17 = vshll.u32 %v2600_v8, %v921_v40  ;;  %vm795_vm8 = vcmp.eq.s32.totalorder %v3047_v45, 0 }
 0x255   : > { %v697_v41 = vsel %vm690_vm2, %v693_v38, %v696_v36  ;;  %vm3106_vm9 = vcmp.le.f32.partialorder %v803_v50, 0.7853982  ;;  %vm2374_vm10 = vcmp.lt.s32.totalorder %v2373_v63, 0  ;;  %v923_v40 = vshrl.u32 %v2596_v55, %v922_v49 }
 0x256   : > { %v698_v14 = vsel %vm687_vm5, nan, %v697_v41  ;;  %vm939_vm11 = vcmp.lt.s32.totalorder %v3054_v56, 1  ;;  %vm794_vm12 = vcmp.lt.s32.totalorder %v3047_v45, 2  ;;  %v874_v23 = vsel %vm2374_vm10, 0, %v2373_v63 }
 0x257   : > { %v2263_v20 = vmul.f32 %v3085_v31, %v698_v14  ;;  %v938_v25 = vor.u32 %v937_v19, %v936_v17  ;;  %vm942_vm13 = vcmp.lt.s32.totalorder %v3054_v56, 4  ;;  %vm791_vm14 = vweird.f32 %v2828_v32 }
 0x258   : > { %v875_v24 = vsub.s32 32, %v874_v23  ;;  %v879_v50 = vsub.s32 4294967266, %v874_v23  ;;  %vm940_vm0 = vcmp.lt.s32.totalorder %v3054_v56, 2  ;;  %v944_v3 = vsel %vm942_vm13, %v932_v44, 2102212464 }
 0x259   : > { %2280 = vst.msk [vmem:[%s3099_s29] sm:$0xff] %vm2279_vm6, %v2263_v20  ;;  %v876_v49 = vshll.u32 %v3042_v46, %v874_v23  ;;  %vm941_vm1 = vcmp.lt.s32.totalorder %v3054_v56, 3  ;;  %v947_v30 = vsel %vm939_vm11, %v926_v29, %v929_v47  ;;  %v948_v39 = vsel %vm942_vm13, %v935_v57, 920167782  ;;  %v2518_v42 = vpop.eup %2517 }
 0x25a   : > { %v877_v21 = vshrl.u32 %v859_v52, %v875_v24  ;;  %v880_v51 = vadd.s32 127, %v879_v50  ;;  %v949_v7 = vsel %vm941_vm1, %v932_v44, %v948_v39  ;;  %v951_v53 = vsel %vm939_vm11, %v929_v47, %v932_v44  ;;  %v2520_v37 = vpop.eup %2519 }
 0x25b   : > { %v943_v46 = vsel %vm939_vm11, %v923_v40, %v926_v29  ;;  %v945_v36 = vsel %vm941_vm1, %v929_v47, %v944_v3  ;;  %v950_v26 = vsel %vm940_vm0, %v947_v30, %v949_v7  ;;  %v952_v52 = vsel %vm942_vm13, %v938_v25, 1326507024 }
 0x25c   : > { %v799_v38 = vxor.u32 2147483648, %v2518_v42  ;;  %v878_v63 = vor.u32 %v877_v21, %v876_v49  ;;  %v881_v19 = vshll.u32 %v880_v51, 23  ;;  %v953_v44 = vsel %vm941_vm1, %v935_v57, %v952_v52 }
 0x25d   : > { %v796_v41 = vxor.u32 2147483648, %v2520_v37  ;;  %v954_v29 = vsel %vm940_vm0, %v951_v53, %v953_v44  ;;  %v3144_v17 = vmul.u32.u64.low %v3051_v27, %v950_v26  ;;  %v3145_v47 = vmul.u32.u64.high %v3051_v27, %v950_v26, %v3144_v17 }
 0x25e   : > { %v800_v14 = vsel %vm798_vm7, %v799_v38, %v2520_v37  ;;  %v882_v40 = vor.u32 4788187, %v881_v19  ;;  %v946_v20 = vsel %vm940_vm0, %v943_v46, %v945_v36  ;;  %v1025_v23 = vand.u32 31, %v3057_v60 }
 0x25f   : > { %v797_v57 = vsel %vm795_vm8, %v2518_v42, %v796_v41  ;;  %v892_v25 = vsel %vm3106_vm9, 0, %v3063_v13  ;;  %v3159_v24 = vmul.u32.u64.low %v3051_v27, %v954_v29  ;;  %v3160_v50 = vmul.u32.u64.high %v3051_v27, %v954_v29, %v3159_v24 }
 0x260   : > { %v801_v3 = vsel %vm794_vm12, %v797_v57, %v800_v14  ;;  %v883_v49 = vand.u32 2147483647, %v882_v40  ;;  %v885_v56 = vcvt.s32.f32 %v878_v63  ;;  %v1026_v30 = vsub.s32 32, %v1025_v23 }
 0x261   : > { %v802_v39 = vsel %vm791_vm14, nan, %v801_v3  ;;  %v962_v21 = vmul.u32 %v3051_v27, %v946_v20  ;;  %v965_v51 = vadd.s32 1, %v3145_v47  ;;  %v3169_v13 = vshrl.u32 %v3057_v60, 5 }
 0x262   : > { %v2264_v7 = vmul.f32 %v3085_v31, %v802_v39  ;;  %v886_v53 = vmul.f32 %v885_v56, %v883_v49  ;;  %v1028_v45 = vshll.u32 %v2596_v55, %v1025_v23  ;;  %v1029_v42 = vshrl.u32 %v2597_v59, %v1026_v30 }
 0x263   : > { %vm964_vm2 = vc.u32 %v3160_v50, %v3144_v17  ;;  %v1031_v32 = vshll.u32 %v2597_v59, %v1025_v23  ;;  %v1032_v46 = vshrl.u32 %v2598_v0, %v1026_v30  ;;  %v1035_v27 = vshrl.u32 %v2599_v4, %v1026_v30 }
 0x264   : > { %2281 = vst.msk [vmem:[%s3099_s29 + $0x8] sm:$0xff] %vm2279_vm6, %v2264_v7  ;;  %v887_v60 = vxor.u32 2147483648, %v886_v53  ;;  %v966_v36 = vsel %vm964_vm2, %v965_v51, %v3145_v47  ;;  %v1030_v26 = vor.u32 %v1029_v42, %v1028_v45  ;;  %v1034_v52 = vshll.u32 %v2598_v0, %v1025_v23 }
 0x265   : > { %v967_v37 = vadd.s32 %v966_v36, %v962_v21  ;;  %v1033_v38 = vor.u32 %v1032_v46, %v1031_v32  ;;  %v1037_v63 = vshll.u32 %v2599_v4, %v1025_v23  ;;  %v1038_v19 = vshrl.u32 %v2600_v8, %v1026_v30 }
 0x266   : > { %v888_v44 = vsel %vm805_vm15, %v887_v60, %v886_v53  ;;  %v1036_v41 = vor.u32 %v1035_v27, %v1034_v52  ;;  %v1040_v29 = vshll.u32 %v2600_v8, %v1025_v23  ;;  %v1041_v14 = vshrl.u32 %v2601_v22, %v1026_v30 }
 0x267   : > { %v891_v47 = vsel %vm3106_vm9, %v2831_v33, %v888_v44  ;;  %v896_v40 = vadd.s32 3, %v892_v25  ;;  %v968_v20 = vadd.s32 536870912, %v967_v37  ;;  %v1039_v57 = vor.u32 %v1038_v19, %v1037_v63  ;;  %v500_v19 = vpop.permute.xlu0 %499 }
 0x268   : > { %2521 = vcosq.f32 %v891_v47  ;;  %v1027_v24 = vshrl.u32 %v2596_v55, %v1026_v30  ;;  %v1042_v3 = vor.u32 %v1041_v14, %v1040_v29  ;;  %vm1043_vm3 = vcmp.lt.s32.totalorder %v3169_v13, 1 }
 0x269   : > { %2523 = vsinq.f32 %v891_v47  ;;  %v969_v49 = vshrl.u32 %v968_v20, 30  ;;  %vm1046_vm15 = vcmp.lt.s32.totalorder %v3169_v13, 4  ;;  %v1051_v23 = vsel %vm1043_vm3, %v1030_v26, %v1033_v38 }
 0x26a   : > { %vm1045_vm5 = vcmp.lt.s32.totalorder %v3169_v13, 3  ;;  %v1052_v54 = vsel %vm1046_vm15, %v1039_v57, 920167782  ;;  %v1055_v25 = vsel %vm1043_vm3, %v1033_v38, %v1036_v41  ;;  %v1056_v56 = vsel %vm1046_vm15, %v1042_v3, 1326507024 }
 0x26b   : > { %v970_v39 = vshll.u32 %v969_v49, 30  ;;  %vm1044_vm7 = vcmp.lt.s32.totalorder %v3169_v13, 2  ;;  %v1048_v30 = vsel %vm1046_vm15, %v1036_v41, 2102212464  ;;  %v1053_v21 = vsel %vm1045_vm5, %v1036_v41, %v1052_v54 }
 0x26c   : > { %v1054_v51 = vsel %vm1044_vm7, %v1051_v23, %v1053_v21  ;;  %v1057_v7 = vsel %vm1045_vm5, %v1039_v57, %v1056_v56  ;;  %v1059_v53 = vshll.u32 %v1019_v35, 8  ;;  %v3211_v45 = vadd.f32 %v2808_v16, %v3067_v18 }
 0x26d   : > { %v897_v42 = vand.u32 3, %v896_v40  ;;  %v3213_v32 = vsub.s32 %v967_v37, %v970_v39  ;;  %v1047_v46 = vsel %vm1043_vm3, %v1027_v24, %v1030_v26  ;;  %v1058_v27 = vsel %vm1044_vm7, %v1055_v25, %v1057_v7 }
 0x26e   : > { %v993_v60 = vsub.s32 4, %v969_v49  ;;  %v1049_v36 = vsel %vm1045_vm5, %v1033_v38, %v1048_v30  ;;  %v3221_v52 = vmul.u32.u64.low %v1059_v53, %v1058_v27  ;;  %v3222_v43 = vmul.u32.u64.high %v1059_v53, %v1058_v27, %v3221_v52 }
 0x26f   : > { %v973_v35 = vsub.s32 0, %v3213_v32  ;;  %v3225_v18 = vmul.u32.u64.low %v1059_v53, %v1054_v51  ;;  %v3226_v63 = vmul.u32.u64.high %v1059_v53, %v1054_v51, %v3225_v18  ;;  %vm3230_vm8 = vcmp.le.f32.partialorder %v907_v12, 0.7853982 }
 0x270   : > { %vm909_vm9 = vcmp.lt.s32.totalorder %v2927_v34, 0  ;;  %v1118_v26 = vand.u32 2139095040, %v3211_v45  ;;  %vm898_vm10 = vcmp.lt.s32.totalorder %v897_v42, 2  ;;  %v1050_v44 = vsel %vm1044_vm7, %v1047_v46, %v1049_v36 }
 0x271   : > { %v2376_v38 = vmin.u32 %v973_v35, %v3213_v32  ;;  %v1115_v41 = vand.u32 2147483647, %v3211_v45  ;;  %vm899_vm11 = vcmp.eq.s32.totalorder %v897_v42, 0  ;;  %vm902_vm12 = vcmp.eq.s32.totalorder %v897_v42, 2 }
 0x272   : > { %v2522_v29 = vpop.eup %2521  ;;  %v994_v12 = vsel %vm909_vm9, %v993_v60, %v969_v49  ;;  %v1119_v14 = vshrl.u32 %v1118_v26, 23  ;;  %vm1068_vm13 = vc.u32 %v3222_v43, %v3225_v18  ;;  %v542_v57 = vsel %vm535_vm4, %v2769_v58, %v500_v19 }
 0x273   : > { %v2524_v47 = vpop.eup %2523  ;;  %v903_v40 = vxor.u32 2147483648, %v2522_v29  ;;  %v975_v20 = vclz %v2376_v38  ;;  %v1066_v13 = vmul.u32 %v1059_v53, %v1050_v44  ;;  %v1069_v3 = vadd.s32 1, %v3226_v63 }
 0x274   : > { %v900_v24 = vxor.u32 2147483648, %v2524_v47  ;;  %v2383_v23 = vadd.s32 4294967169, %v1119_v14  ;;  %v996_v56 = vsel %vm3230_vm8, 0, %v994_v12  ;;  %v1122_v49 = vand.u32 8388607, %v1115_v41 }
 0x275   : > { %v904_v54 = vsel %vm902_vm12, %v903_v40, %v2524_v47  ;;  %v2377_v25 = vadd.s32 4294967294, %v975_v20  ;;  %v1070_v30 = vsel %vm1068_vm13, %v1069_v3, %v3226_v63  ;;  %v565_v58 = vmul.f32 %v2798_v11, %v542_v57 }
 0x276   : > { %v901_v39 = vsel %vm899_vm11, %v2522_v29, %v900_v24  ;;  %v1125_v21 = vadd.s32 1, %v2383_v23  ;;  %vm895_vm14 = vweird.f32 %v2831_v33  ;;  %v1071_v7 = vadd.s32 %v1070_v30, %v1066_v13 }
 0x277   : > { %v905_v51 = vsel %vm898_vm10, %v901_v39, %v904_v54  ;;  %vm2378_vm0 = vcmp.lt.s32.totalorder %v2377_v25, 0  ;;  %v963_v46 = vadd.s32 %v3144_v17, %v3160_v50  ;;  %v1000_v35 = vadd.s32 3, %v996_v56 }
 0x278   : > { %v906_v53 = vsel %vm895_vm14, nan, %v905_v51  ;;  %v978_v27 = vsel %vm2378_vm0, 0, %v2377_v25  ;;  %vm1126_vm1 = vcmp.gt.s32.totalorder %v1125_v21, 0  ;;  %v1072_v63 = vadd.s32 536870912, %v1071_v7 }
 0x279   : > { %v2265_v60 = vmul.f32 %v3085_v31, %v906_v53  ;;  %v979_v36 = vsub.s32 32, %v978_v27  ;;  %v983_v52 = vsub.s32 4294967266, %v978_v27  ;;  %v1123_v11 = vor.u32 8388608, %v1122_v49 }
 0x27a   : > { %v1127_v26 = vsel %vm1126_vm1, %v1125_v21, 0  ;;  %v3259_v33 = vadd.f32 %v2808_v16, %v565_v58  ;;  %v980_v42 = vshll.u32 %v3213_v32, %v978_v27  ;;  %v3264_v50 = vshrl.u32 %v1072_v63, 30 }
 0x27b   : > { %2282 = vst.msk [vmem:[%s3099_s29 + $0x10] sm:$0xff] %vm2279_vm6, %v2265_v60  ;;  %v981_v19 = vshrl.u32 %v963_v46, %v979_v36  ;;  %v984_v38 = vadd.s32 127, %v983_v52  ;;  %v1129_v17 = vand.u32 31, %v1127_v26  ;;  %v3266_v14 = vand.u32 3, %v1000_v35 }
 0x27c   : > { %v3269_v47 = vadd.s32 %v3225_v18, %v3222_v43  ;;  %v1074_v16 = vshll.u32 %v3264_v50, 30  ;;  %v3273_v57 = vshll.u32 %v1123_v11, 8  ;;  %v1222_v32 = vand.u32 2139095040, %v3259_v33 }
 0x27d   : > { %v982_v44 = vor.u32 %v981_v19, %v980_v42  ;;  %v985_v29 = vshll.u32 %v984_v38, 23  ;;  %v1130_v12 = vsub.s32 32, %v1129_v17  ;;  %v1128_v13 = vshrl.u32 %v1127_v26, 5 }
 0x27e   : > { %v3276_v24 = vsub.s32 %v1071_v7, %v1074_v16  ;;  %v1132_v3 = vshll.u32 %v2596_v55, %v1129_v17  ;;  %v1135_v43 = vshll.u32 %v2597_v59, %v1129_v17  ;;  %v1138_v39 = vshll.u32 %v2598_v0, %v1129_v17 }
 0x27f   : > { %v986_v40 = vor.u32 4788187, %v985_v29  ;;  %v1133_v20 = vshrl.u32 %v2597_v59, %v1130_v12  ;;  %v1136_v23 = vshrl.u32 %v2598_v0, %v1130_v12  ;;  %v989_v25 = vcvt.s32.f32 %v982_v44 }
 0x280   : > { %v1139_v18 = vshrl.u32 %v2599_v4, %v1130_v12  ;;  %v1077_v56 = vsub.s32 0, %v3276_v24  ;;  %v1141_v30 = vshll.u32 %v2599_v4, %v1129_v17  ;;  %v1142_v51 = vshrl.u32 %v2600_v8, %v1130_v12 }
 0x281   : > { %v987_v54 = vand.u32 2147483647, %v986_v40  ;;  %v1134_v49 = vor.u32 %v1133_v20, %v1132_v3  ;;  %v1137_v58 = vor.u32 %v1136_v23, %v1135_v43  ;;  %v1145_v7 = vshrl.u32 %v2601_v22, %v1130_v12 }
 0x282   : > { %vm1013_vm2 = vcmp.lt.s32.totalorder %v2993_v48, 0  ;;  %v2380_v53 = vmin.u32 %v1077_v56, %v3276_v24  ;;  %v1097_v46 = vsub.s32 4, %v3264_v50  ;;  %v1219_v27 = vand.u32 2147483647, %v3259_v33 }
 0x283   : > { %v990_v21 = vmul.f32 %v989_v25, %v987_v54  ;;  %v1223_v60 = vshrl.u32 %v1222_v32, 23  ;;  %v1140_v52 = vor.u32 %v1139_v18, %v1138_v39  ;;  %v1143_v35 = vor.u32 %v1142_v51, %v1141_v30 }
 0x284   : > { %v1144_v63 = vshll.u32 %v2600_v8, %v1129_v17  ;;  %v1079_v11 = vclz %v2380_v53  ;;  %v1131_v26 = vshrl.u32 %v2596_v55, %v1130_v12  ;;  %vm1147_vm3 = vcmp.lt.s32.totalorder %v1128_v13, 1 }
 0x285   : > { %v991_v36 = vxor.u32 2147483648, %v990_v21  ;;  %vm1148_vm15 = vcmp.lt.s32.totalorder %v1128_v13, 2  ;;  %vm3297_vm5 = vcmp.le.f32.partialorder %v1011_v28, 0.7853982  ;;  %vm1150_vm7 = vcmp.lt.s32.totalorder %v1128_v13, 4 }
 0x286   : > { %v1146_v38 = vor.u32 %v1145_v7, %v1144_v63  ;;  %v1155_v44 = vsel %vm1147_vm3, %v1134_v49, %v1137_v58  ;;  %v2381_v29 = vadd.s32 4294967294, %v1079_v11  ;;  %vm1149_vm10 = vcmp.lt.s32.totalorder %v1128_v13, 3  ;;  %v502_v63 = vpop.permute.xlu1 %501 }
 0x287   : > { %v992_v42 = vsel %vm909_vm9, %v991_v36, %v990_v21  ;;  %v1156_v12 = vsel %vm1150_vm7, %v1143_v35, 920167782  ;;  %v1151_v16 = vsel %vm1147_vm3, %v1131_v26, %v1134_v49  ;;  %v1152_v40 = vsel %vm1150_vm7, %v1140_v52, 2102212464 }
 0x288   : > { %v995_v17 = vsel %vm3230_vm8, %v2927_v34, %v992_v42  ;;  %v1157_v28 = vsel %vm1149_vm10, %v1140_v52, %v1156_v12  ;;  %vm2382_vm9 = vcmp.lt.s32.totalorder %v2381_v29, 0  ;;  %v1159_v32 = vsel %vm1147_vm3, %v1137_v58, %v1140_v52 }
 0x289   : > { %2525 = vcosq.f32 %v995_v17  ;;  %v1158_v20 = vsel %vm1148_vm15, %v1155_v44, %v1157_v28  ;;  %v1082_v3 = vsel %vm2382_vm9, 0, %v2381_v29  ;;  %v1160_v23 = vsel %vm1150_vm7, %v1146_v38, 1326507024 }
 0x28a   : > { %2527 = vsinq.f32 %v995_v17  ;;  %v3310_v37 = vmul.u32.u64.low %v3273_v57, %v1158_v20  ;;  %v3311_v54 = vmul.u32.u64.high %v3273_v57, %v1158_v20, %v3310_v37  ;;  %v1083_v25 = vsub.s32 32, %v1082_v3 }
 0x28b   : > { %v1087_v43 = vsub.s32 4294967266, %v1082_v3  ;;  %v1153_v18 = vsel %vm1149_vm10, %v1137_v58, %v1152_v40  ;;  %v1161_v56 = vsel %vm1149_vm10, %v1143_v35, %v1160_v23  ;;  %v1084_v49 = vshll.u32 %v3276_v24, %v1082_v3  ;;  %v504_v3 = vpop.permute.xlu0 %503 }
 0x28c   : > { %v1098_v39 = vsel %vm1013_vm2, %v1097_v46, %v3264_v50  ;;  %v1162_v30 = vsel %vm1148_vm15, %v1159_v32, %v1161_v56  ;;  %v2387_v21 = vadd.s32 4294967169, %v1223_v60  ;;  %v1085_v51 = vshrl.u32 %v3269_v47, %v1083_v25  ;;  %v3344_v32 = vld [vmem:[%s4227_s0] ss:$0 sm:$0xff] }
 0x28d   : > { %v1088_v7 = vadd.s32 127, %v1087_v43  ;;  %v3323_v53 = vmul.u32.u64.low %v3273_v57, %v1162_v30  ;;  %v3324_v36 = vmul.u32.u64.high %v3273_v57, %v1162_v30, %v3323_v53  ;;  %v1154_v58 = vsel %vm1148_vm15, %v1151_v16, %v1153_v18 }
 0x28e   : > { %v1173_v52 = vadd.s32 1, %v3311_v54  ;;  %v1226_v24 = vand.u32 8388607, %v1219_v27  ;;  %v1229_v35 = vadd.s32 1, %v2387_v21  ;;  %v1086_v50 = vor.u32 %v1085_v51, %v1084_v49 }
 0x28f   : > { %v1089_v46 = vshll.u32 %v1088_v7, 23  ;;  %v1100_v60 = vsel %vm3297_vm5, 0, %v1098_v39  ;;  %vm999_vm8 = vweird.f32 %v2927_v34  ;;  %vm1002_vm11 = vcmp.lt.s32.totalorder %v3266_v14, 2 }
 0x290   : > { %vm1230_vm12 = vcmp.gt.s32.totalorder %v1229_v35, 0  ;;  %v1170_v13 = vmul.u32 %v3273_v57, %v1154_v58  ;;  %vm1172_vm13 = vc.u32 %v3324_v36, %v3310_v37  ;;  %v543_v11 = vsel %vm535_vm4, %v2772_v61, %v502_v63 }
 0x291   : > { %v1090_v47 = vor.u32 4788187, %v1089_v46  ;;  %v1104_v42 = vadd.s32 3, %v1100_v60  ;;  %v1174_v38 = vsel %vm1172_vm13, %v1173_v52, %v3311_v54  ;;  %v1227_v44 = vor.u32 8388608, %v1226_v24  ;;  %v3365_v52 = vld [vmem:[%s4227_s0 + $0x1] ss:$0 sm:$0xff] }
 0x292   : > { %v1231_v17 = vsel %vm1230_vm12, %v1229_v35, 0  ;;  %v1093_v40 = vcvt.s32.f32 %v1086_v50  ;;  %v1175_v28 = vadd.s32 %v1174_v38, %v1170_v13  ;;  %vm1006_vm14 = vcmp.eq.s32.totalorder %v3266_v14, 2 }
 0x293   : > { %v2526_v26 = vpop.eup %2525  ;;  %v1091_v16 = vand.u32 2147483647, %v1090_v47  ;;  %v1233_v57 = vand.u32 31, %v1231_v17  ;;  %v566_v61 = vmul.f32 %v3344_v32, %v543_v11  ;;  %vm1003_vm0 = vcmp.eq.s32.totalorder %v3266_v14, 0 }
 0x294   : > { %v2528_v29 = vpop.eup %2527  ;;  %v1007_v12 = vxor.u32 2147483648, %v2526_v26  ;;  %v1176_v25 = vadd.s32 536870912, %v1175_v28  ;;  %v3348_v18 = vand.u32 3, %v1104_v42  ;;  %v3350_v49 = vshll.u32 %v1227_v44, 8 }
 0x295   : > { %v1004_v20 = vxor.u32 2147483648, %v2528_v29  ;;  %v1094_v54 = vmul.f32 %v1093_v40, %v1091_v16  ;;  %v1234_v56 = vsub.s32 32, %v1233_v57  ;;  %v544_v51 = vsel %vm535_vm4, %v2775_v62, %v504_v3 }
 0x296   : > { %v1008_v23 = vsel %vm1006_vm14, %v1007_v12, %v2528_v29  ;;  %v3354_v21 = vshrl.u32 %v1176_v25, 30  ;;  %v3368_v14 = vadd.f32 %v3365_v52, %v566_v61  ;;  %v1236_v35 = vshll.u32 %v2596_v55, %v1233_v57 }
 0x297   : > { %v1005_v43 = vsel %vm1003_vm0, %v2526_v26, %v1004_v20  ;;  %v1095_v30 = vxor.u32 2147483648, %v1094_v54  ;;  %v1237_v53 = vshrl.u32 %v2597_v59, %v1234_v56  ;;  %v1240_v58 = vshrl.u32 %v2598_v0, %v1234_v56  ;;  %v506_v26 = vpop.permute.xlu1 %505 }
 0x298   : > { %v1009_v39 = vsel %vm1002_vm11, %v1005_v43, %v1008_v23  ;;  %v1178_v34 = vshll.u32 %v3354_v21, 30  ;;  %v3378_v50 = vshrl.u32 %v1231_v17, 5  ;;  %v1239_v46 = vshll.u32 %v2597_v59, %v1233_v57 }
 0x299   : > { %v1010_v7 = vsel %vm999_vm8, nan, %v1009_v39  ;;  %v1096_v62 = vsel %vm1013_vm2, %v1095_v30, %v1094_v54  ;;  %v1243_v60 = vshrl.u32 %v2599_v4, %v1234_v56  ;;  %v1238_v13 = vor.u32 %v1237_v53, %v1236_v35 }
 0x29a   : > { %v2266_v24 = vmul.f32 %v3085_v31, %v1010_v7  ;;  %v1099_v63 = vsel %vm3297_vm5, %v2993_v48, %v1096_v62  ;;  %v3384_v47 = vsub.s32 %v1175_v28, %v1178_v34  ;;  %v1242_v11 = vshll.u32 %v2598_v0, %v1233_v57 }
 0x29b   : > { %2529 = vcosq.f32 %v1099_v63  ;;  %v1241_v42 = vor.u32 %v1240_v58, %v1239_v46  ;;  %v1245_v19 = vshll.u32 %v2599_v4, %v1233_v57  ;;  %v1246_v38 = vshrl.u32 %v2600_v8, %v1234_v56 }
 0x29c   : > { %2283 = vst.msk [vmem:[%s3099_s29 + $0x18] sm:$0xff] %vm2279_vm6, %v2266_v24  ;;  %2531 = vsinq.f32 %v1099_v63  ;;  %v1181_v44 = vsub.s32 0, %v3384_v47  ;;  %v1244_v17 = vor.u32 %v1243_v60, %v1242_v11  ;;  %v1248_v29 = vshll.u32 %v2600_v8, %v1233_v57 }
 0x29d   : > { %v1249_v12 = vshrl.u32 %v2601_v22, %v1234_v56  ;;  %v1247_v16 = vor.u32 %v1246_v38, %v1245_v19  ;;  %v1326_v40 = vand.u32 2139095040, %v3368_v14  ;;  %v3394_v28 = vmul.f32 %v3344_v32, %v544_v51 }
 0x29e   : > { %v3398_v20 = vsel %vm535_vm4, %v2778_v1, %v506_v26  ;;  %vm1110_vm1 = vcmp.eq.s32.totalorder %v3348_v18, 2  ;;  %vm1117_vm2 = vcmp.lt.s32.totalorder %v3211_v45, 0  ;;  %v2384_v61 = vmin.u32 %v1181_v44, %v3384_v47 }
 0x29f   : > { %v1250_v3 = vor.u32 %v1249_v12, %v1248_v29  ;;  %vm1251_vm3 = vcmp.lt.s32.totalorder %v3378_v50, 1  ;;  %vm1254_vm15 = vcmp.lt.s32.totalorder %v3378_v50, 4  ;;  %vm1107_vm5 = vcmp.eq.s32.totalorder %v3348_v18, 0 }
 0x2a0   : > { %v1201_v57 = vsub.s32 4, %v3354_v21  ;;  %v1235_v23 = vshrl.u32 %v2596_v55, %v1234_v56  ;;  %v1259_v1 = vsel %vm1251_vm3, %v1238_v13, %v1241_v42  ;;  %v1260_v54 = vsel %vm1254_vm15, %v1247_v16, 920167782 }
 0x2a1   : > { %vm1106_vm7 = vcmp.lt.s32.totalorder %v3348_v18, 2  ;;  %v1183_v25 = vclz %v2384_v61  ;;  %vm1253_vm10 = vcmp.lt.s32.totalorder %v3378_v50, 3  ;;  %v1256_v43 = vsel %vm1254_vm15, %v1244_v17, 2102212464 }
 0x2a2   : > { %v1263_v39 = vsel %vm1251_vm3, %v1241_v42, %v1244_v17  ;;  %vm1103_vm9 = vweird.f32 %v2993_v48  ;;  %vm1252_vm8 = vcmp.lt.s32.totalorder %v3378_v50, 2  ;;  %v1261_v30 = vsel %vm1253_vm10, %v1244_v17, %v1260_v54 }
 0x2a3   : > { %v1264_v51 = vsel %vm1254_vm15, %v1250_v3, 1326507024  ;;  %v1327_v56 = vshrl.u32 %v1326_v40, 23  ;;  %v2385_v7 = vadd.s32 4294967294, %v1183_v25  ;;  %v1255_v53 = vsel %vm1251_vm3, %v1235_v23, %v1238_v13 }
 0x2a4   : > { %v1262_v58 = vsel %vm1252_vm8, %v1259_v1, %v1261_v30  ;;  %v1265_v24 = vsel %vm1253_vm10, %v1247_v16, %v1264_v51  ;;  %vm3422_vm11 = vcmp.le.f32.partialorder %v1115_v41, 0.7853982  ;;  %v1257_v34 = vsel %vm1253_vm10, %v1241_v42, %v1256_v43 }
 0x2a5   : > { %v1266_v35 = vsel %vm1252_vm8, %v1263_v39, %v1265_v24  ;;  %v3429_v63 = vmul.u32.u64.low %v3350_v49, %v1262_v58  ;;  %v3430_v46 = vmul.u32.u64.high %v3350_v49, %v1262_v58, %v3429_v63  ;;  %v2530_v60 = vpop.eup %2529  ;;  %vm2386_vm12 = vcmp.lt.s32.totalorder %v2385_v7, 0 }
 0x2a6   : > { %v3434_v13 = vmul.u32.u64.low %v3350_v49, %v1266_v35  ;;  %v3435_v11 = vmul.u32.u64.high %v3350_v49, %v1266_v35, %v3434_v13  ;;  %v2391_v26 = vadd.s32 4294967169, %v1327_v56  ;;  %v2532_v41 = vpop.eup %2531  ;;  %v1111_v19 = vxor.u32 2147483648, %v2530_v60 }
 0x2a7   : > { %v1171_v42 = vadd.s32 %v3310_v37, %v3324_v36  ;;  %v1186_v38 = vsel %vm2386_vm12, 0, %v2385_v7  ;;  %v1323_v44 = vand.u32 2147483647, %v3368_v14  ;;  %v1108_v17 = vxor.u32 2147483648, %v2532_v41 }
 0x2a8   : > { %v1187_v29 = vsub.s32 32, %v1186_v38  ;;  %v1191_v12 = vsub.s32 4294967266, %v1186_v38  ;;  %v1258_v16 = vsel %vm1252_vm8, %v1255_v53, %v1257_v34  ;;  %v1112_v40 = vsel %vm1110_vm1, %v1111_v19, %v2532_v41 }
 0x2a9   : > { %v1202_v61 = vsel %vm1117_vm2, %v1201_v57, %v3354_v21  ;;  %v1277_v3 = vadd.s32 1, %v3430_v46  ;;  %v1333_v23 = vadd.s32 1, %v2391_v26  ;;  %v1109_v37 = vsel %vm1107_vm5, %v2530_v60, %v1108_v17 }
 0x2aa   : > { %v1188_v36 = vshll.u32 %v3384_v47, %v1186_v38  ;;  %v1189_v1 = vshrl.u32 %v1171_v42, %v1187_v29  ;;  %v1192_v54 = vadd.s32 127, %v1191_v12  ;;  %v1113_v50 = vsel %vm1106_vm7, %v1109_v37, %v1112_v40 }
 0x2ab   : > { %v1274_v25 = vmul.u32 %v3350_v49, %v1258_v16  ;;  %vm1276_vm13 = vc.u32 %v3435_v11, %v3429_v63  ;;  %vm1334_vm14 = vcmp.gt.s32.totalorder %v1333_v23, 0  ;;  %v1114_v21 = vsel %vm1103_vm9, nan, %v1113_v50 }
 0x2ac   : > { %v1190_v57 = vor.u32 %v1189_v1, %v1188_v36  ;;  %v1193_v43 = vshll.u32 %v1192_v54, 23  ;;  %v1278_v39 = vsel %vm1276_vm13, %v1277_v3, %v3430_v46  ;;  %v2267_v47 = vmul.f32 %v3085_v31, %v1114_v21 }
 0x2ad   : > { %v1279_v30 = vadd.s32 %v1278_v39, %v1274_v25  ;;  %v1330_v18 = vand.u32 8388607, %v1323_v44  ;;  %v1335_v51 = vsel %vm1334_vm14, %v1333_v23, 0  ;;  %v1204_v49 = vsel %vm3422_vm11, 0, %v1202_v61 }
 0x2ae   : > { %v1194_v56 = vor.u32 4788187, %v1193_v43  ;;  %v1337_v7 = vand.u32 31, %v1335_v51  ;;  %2284 = vst.msk [vmem:[%s3099_s29 + $0x20] sm:$0xff] %vm2279_vm6, %v2267_v47  ;;  %v1197_v58 = vcvt.s32.f32 %v1190_v57  ;;  %v3468_v34 = vmul.f32 %v3344_v32, %v3398_v20 }
 0x2af   : > { %v1280_v48 = vadd.s32 536870912, %v1279_v30  ;;  %v1208_v35 = vadd.s32 3, %v1204_v49  ;;  %v1331_v60 = vor.u32 8388608, %v1330_v18  ;;  %v3472_v13 = vadd.f32 %v3365_v52, %v3394_v28 }
 0x2b0   : > { %v1195_v53 = vand.u32 2147483647, %v1194_v56  ;;  %v1338_v24 = vsub.s32 32, %v1337_v7  ;;  %v1340_v41 = vshll.u32 %v2596_v55, %v1337_v7  ;;  %v1343_v17 = vshll.u32 %v2597_v59, %v1337_v7 }
 0x2b1   : > { %v1281_v46 = vshrl.u32 %v1280_v48, 30  ;;  %v1346_v16 = vshll.u32 %v2598_v0, %v1337_v7  ;;  %v1349_v28 = vshll.u32 %v2599_v4, %v1337_v7  ;;  %v1336_v3 = vshrl.u32 %v1335_v51, 5 }
 0x2b2   : > { %v1198_v26 = vmul.f32 %v1197_v58, %v1195_v53  ;;  %v1341_v19 = vshrl.u32 %v2597_v59, %v1338_v24  ;;  %v1344_v42 = vshrl.u32 %v2598_v0, %v1338_v24  ;;  %v1347_v20 = vshrl.u32 %v2599_v4, %v1338_v24 }
 0x2b3   : > { %v1282_v38 = vshll.u32 %v1281_v46, 30  ;;  %v1350_v29 = vshrl.u32 %v2600_v8, %v1338_v24  ;;  %v1353_v40 = vshrl.u32 %v2601_v22, %v1338_v24  ;;  %v1352_v37 = vshll.u32 %v2600_v8, %v1337_v7 }
 0x2b4   : > { %v1199_v12 = vxor.u32 2147483648, %v1198_v26  ;;  %v1342_v23 = vor.u32 %v1341_v19, %v1340_v41  ;;  %vm1221_vm0 = vcmp.lt.s32.totalorder %v3259_v33, 0  ;;  %v1345_v1 = vor.u32 %v1344_v42, %v1343_v17 }
 0x2b5   : > { %v3483_v61 = vsub.s32 %v1279_v30, %v1282_v38  ;;  %v1348_v54 = vor.u32 %v1347_v20, %v1346_v16  ;;  %v1351_v50 = vor.u32 %v1350_v29, %v1349_v28  ;;  %v3492_v21 = vand.u32 3, %v1208_v35 }
 0x2b6   : > { %v1200_v36 = vsel %vm1117_vm2, %v1199_v12, %v1198_v26  ;;  %v3495_v43 = vshll.u32 %v1331_v60, 8  ;;  %v1354_v39 = vor.u32 %v1353_v40, %v1352_v37  ;;  %v1427_v47 = vand.u32 2147483647, %v3472_v13 }
 0x2b7   : > { %v1203_v25 = vsel %vm3422_vm11, %v3211_v45, %v1200_v36  ;;  %v1285_v57 = vsub.s32 0, %v3483_v61  ;;  %v1430_v30 = vand.u32 2139095040, %v3472_v13  ;;  %vm3501_vm1 = vcmp.le.f32.partialorder %v1219_v27, 0.7853982 }
 0x2b8   : > { %2533 = vcosq.f32 %v1203_v25  ;;  %vm1355_vm2 = vcmp.lt.s32.totalorder %v1336_v3, 1  ;;  %vm1358_vm3 = vcmp.lt.s32.totalorder %v1336_v3, 4  ;;  %v1339_v51 = vshrl.u32 %v2596_v55, %v1338_v24 }
 0x2b9   : > { %2535 = vsinq.f32 %v1203_v25  ;;  %v2388_v62 = vmin.u32 %v1285_v57, %v3483_v61  ;;  %v1360_v56 = vsel %vm1358_vm3, %v1348_v54, 2102212464  ;;  %v1363_v49 = vsel %vm1355_vm2, %v1342_v23, %v1345_v1 }
 0x2ba   : > { %v1364_v7 = vsel %vm1358_vm3, %v1351_v50, 920167782  ;;  %v1305_v53 = vsub.s32 4, %v1281_v46  ;;  %vm1357_vm15 = vcmp.lt.s32.totalorder %v1336_v3, 3  ;;  %v1367_v58 = vsel %vm1355_vm2, %v1345_v1, %v1348_v54 }
 0x2bb   : > { %v1287_v48 = vclz %v2388_v62  ;;  %vm1356_vm5 = vcmp.lt.s32.totalorder %v1336_v3, 2  ;;  %v1359_v35 = vsel %vm1355_vm2, %v1339_v51, %v1342_v23  ;;  %v1365_v60 = vsel %vm1357_vm15, %v1348_v54, %v1364_v7 }
 0x2bc   : > { %v1368_v27 = vsel %vm1358_vm3, %v1354_v39, 1326507024  ;;  %v1361_v41 = vsel %vm1357_vm15, %v1345_v1, %v1360_v56  ;;  %v1366_v19 = vsel %vm1356_vm5, %v1363_v49, %v1365_v60  ;;  %vm1210_vm7 = vcmp.lt.s32.totalorder %v3492_v21, 2 }
 0x2bd   : > { %v2389_v26 = vadd.s32 4294967294, %v1287_v48  ;;  %v1369_v42 = vsel %vm1357_vm15, %v1351_v50, %v1368_v27  ;;  %v3511_v38 = vmul.u32.u64.low %v3495_v43, %v1366_v19  ;;  %v3512_v17 = vmul.u32.u64.high %v3495_v43, %v1366_v19, %v3511_v38 }
 0x2be   : > { %v1370_v24 = vsel %vm1356_vm5, %v1367_v58, %v1369_v42  ;;  %v1431_v20 = vshrl.u32 %v1430_v30, 23  ;;  %v1306_v29 = vsel %vm1221_vm0, %v1305_v53, %v1281_v46  ;;  %vm1211_vm9 = vcmp.eq.s32.totalorder %v3492_v21, 0 }
 0x2bf   : > { %vm2390_vm10 = vcmp.lt.s32.totalorder %v2389_v26, 0  ;;  %v3518_v12 = vmul.u32.u64.low %v3495_v43, %v1370_v24  ;;  %v3519_v16 = vmul.u32.u64.high %v3495_v43, %v1370_v24, %v3518_v12  ;;  %vm1214_vm8 = vcmp.eq.s32.totalorder %v3492_v21, 2 }
 0x2c0   : > { %v1290_v28 = vsel %vm2390_vm10, 0, %v2389_v26  ;;  %v2395_v40 = vadd.s32 4294967169, %v1431_v20  ;;  %v1275_v23 = vadd.s32 %v3429_v63, %v3435_v11  ;;  %v1362_v1 = vsel %vm1356_vm5, %v1359_v35, %v1361_v41 }
 0x2c1   : > { %v1291_v37 = vsub.s32 32, %v1290_v28  ;;  %v1295_v36 = vsub.s32 4294967266, %v1290_v28  ;;  %v1308_v46 = vsel %vm3501_vm1, 0, %v1306_v29  ;;  %v1381_v50 = vadd.s32 1, %v3512_v17 }
 0x2c2   : > { %v2534_v54 = vpop.eup %2533  ;;  %v1434_v25 = vand.u32 8388607, %v1427_v47  ;;  %v1437_v57 = vadd.s32 1, %v2395_v40  ;;  %v1292_v62 = vshll.u32 %v3483_v61, %v1290_v28  ;;  %v1378_v3 = vmul.u32 %v3495_v43, %v1362_v1 }
 0x2c3   : > { %v2536_v39 = vpop.eup %2535  ;;  %v1215_v30 = vxor.u32 2147483648, %v2534_v54  ;;  %v1293_v51 = vshrl.u32 %v1275_v23, %v1291_v37  ;;  %v1296_v63 = vadd.s32 127, %v1295_v36  ;;  %vm1380_vm11 = vc.u32 %v3519_v16, %v3511_v38 }
 0x2c4   : > { %v1212_v11 = vxor.u32 2147483648, %v2536_v39  ;;  %vm1438_vm12 = vcmp.gt.s32.totalorder %v1437_v57, 0  ;;  %v1382_v48 = vsel %vm1380_vm11, %v1381_v50, %v3512_v17  ;;  %v1312_v61 = vadd.s32 3, %v1308_v46 }
 0x2c5   : > { %v1216_v56 = vsel %vm1214_vm8, %v1215_v30, %v2536_v39  ;;  %v1294_v49 = vor.u32 %v1293_v51, %v1292_v62  ;;  %v1297_v7 = vshll.u32 %v1296_v63, 23  ;;  %v1383_v58 = vadd.s32 %v1382_v48, %v1378_v3 }
 0x2c6   : > { %v1213_v53 = vsel %vm1211_vm9, %v2534_v54, %v1212_v11  ;;  %v1439_v35 = vsel %vm1438_vm12, %v1437_v57, 0  ;;  %vm1207_vm13 = vweird.f32 %v3211_v45  ;;  %v1435_v27 = vor.u32 8388608, %v1434_v25 }
 0x2c7   : > { %v1217_v43 = vsel %vm1210_vm7, %v1213_v53, %v1216_v56  ;;  %v1298_v60 = vor.u32 4788187, %v1297_v7  ;;  %v1384_v41 = vadd.s32 536870912, %v1383_v58  ;;  %v1441_v19 = vand.u32 31, %v1439_v35 }
 0x2c8   : > { %v1218_v26 = vsel %vm1207_vm13, nan, %v1217_v43  ;;  %v1301_v17 = vcvt.s32.f32 %v1294_v49  ;;  %vm1325_vm14 = vcmp.lt.s32.totalorder %v3368_v14, 0  ;;  %v3545_v20 = vand.u32 3, %v1312_v61 }
 0x2c9   : > { %v2268_v42 = vmul.f32 %v3085_v31, %v1218_v26  ;;  %v1299_v24 = vand.u32 2147483647, %v1298_v60  ;;  %v1385_v29 = vshrl.u32 %v1384_v41, 30  ;;  %v1442_v12 = vsub.s32 32, %v1441_v19 }
 0x2ca   : > { %v3549_v45 = vadd.f32 %v3365_v52, %v3468_v34  ;;  %v3553_v28 = vshrl.u32 %v1439_v35, 5  ;;  %v1444_v40 = vshll.u32 %v2596_v55, %v1441_v19  ;;  %v3556_v31 = vshll.u32 %v1435_v27, 8 }
 0x2cb   : > { %2285 = vst.msk [vmem:[%s3099_s29 + $0x28] sm:$0xff] %vm2279_vm6, %v2268_v42  ;;  %v1302_v21 = vmul.f32 %v1301_v17, %v1299_v24  ;;  %vm3560_vm2 = vcmp.le.f32.partialorder %v1323_v44, 0.7853982  ;;  %v1386_v37 = vshll.u32 %v1385_v29, 30  ;;  %v1445_v36 = vshrl.u32 %v2597_v59, %v1442_v12 }
 0x2cc   : > { %v1447_v34 = vshll.u32 %v2597_v59, %v1441_v19  ;;  %v1450_v1 = vshll.u32 %v2598_v0, %v1441_v19  ;;  %v1448_v46 = vshrl.u32 %v2598_v0, %v1442_v12  ;;  %v1451_v50 = vshrl.u32 %v2599_v4, %v1442_v12 }
 0x2cd   : > { %v1303_v54 = vxor.u32 2147483648, %v1302_v21  ;;  %v1454_v25 = vshrl.u32 %v2600_v8, %v1442_v12  ;;  %v3570_v57 = vsub.s32 %v1383_v58, %v1386_v37  ;;  %v1409_v44 = vsub.s32 4, %v1385_v29 }
 0x2ce   : > { %v1453_v39 = vshll.u32 %v2599_v4, %v1441_v19  ;;  %v1457_v30 = vshrl.u32 %v2601_v22, %v1442_v12  ;;  %v1446_v51 = vor.u32 %v1445_v36, %v1444_v40  ;;  %v1449_v63 = vor.u32 %v1448_v46, %v1447_v34 }
 0x2cf   : > { %v1304_v62 = vsel %vm1221_vm0, %v1303_v54, %v1302_v21  ;;  %v1456_v11 = vshll.u32 %v2600_v8, %v1441_v19  ;;  %v1389_v56 = vsub.s32 0, %v3570_v57  ;;  %v1452_v49 = vor.u32 %v1451_v50, %v1450_v1 }
 0x2d0   : > { %v1307_v3 = vsel %vm3501_vm1, %v3259_v33, %v1304_v62  ;;  %v1455_v7 = vor.u32 %v1454_v25, %v1453_v39  ;;  %vm1459_vm3 = vcmp.lt.s32.totalorder %v3553_v28, 1  ;;  %v1534_v53 = vand.u32 2139095040, %v3549_v45 }
 0x2d1   : > { %2537 = vcosq.f32 %v1307_v3  ;;  %v1458_v48 = vor.u32 %v1457_v30, %v1456_v11  ;;  %v2392_v61 = vmin.u32 %v1389_v56, %v3570_v57  ;;  %v1410_v58 = vsel %vm1325_vm14, %v1409_v44, %v1385_v29 }
 0x2d2   : > { %2539 = vsinq.f32 %v1307_v3  ;;  %vm1462_vm0 = vcmp.lt.s32.totalorder %v3553_v28, 4  ;;  %v1443_v18 = vshrl.u32 %v2596_v55, %v1442_v12  ;;  %vm1460_vm1 = vcmp.lt.s32.totalorder %v3553_v28, 2 }
 0x2d3   : > { %v1467_v35 = vsel %vm1459_vm3, %v1446_v51, %v1449_v63  ;;  %v1468_v43 = vsel %vm1462_vm0, %v1455_v7, 920167782  ;;  %v1391_v60 = vclz %v2392_v61  ;;  %vm1461_vm15 = vcmp.lt.s32.totalorder %v3553_v28, 3 }
 0x2d4   : > { %v1464_v27 = vsel %vm1462_vm0, %v1452_v49, 2102212464  ;;  %v1471_v26 = vsel %vm1459_vm3, %v1449_v63, %v1452_v49  ;;  %v1412_v41 = vsel %vm3560_vm2, 0, %v1410_v58  ;;  %v1469_v19 = vsel %vm1461_vm15, %v1452_v49, %v1468_v43 }
 0x2d5   : > { %v1472_v42 = vsel %vm1462_vm0, %v1458_v48, 1326507024  ;;  %v1535_v24 = vshrl.u32 %v1534_v53, 23  ;;  %v2393_v17 = vadd.s32 4294967294, %v1391_v60  ;;  %v1463_v29 = vsel %vm1459_vm3, %v1443_v18, %v1446_v51 }
 0x2d6   : > { %v1470_v12 = vsel %vm1460_vm1, %v1467_v35, %v1469_v19  ;;  %v1473_v21 = vsel %vm1461_vm15, %v1455_v7, %v1472_v42  ;;  %v1465_v40 = vsel %vm1461_vm15, %v1449_v63, %v1464_v27  ;;  %vm1314_vm7 = vcmp.lt.s32.totalorder %v3545_v20, 2  ;;  %v508_v35 = vpop.permute.xlu0 %507 }
 0x2d7   : > { %v1474_v37 = vsel %vm1460_vm1, %v1471_v26, %v1473_v21  ;;  %v3603_v36 = vmul.u32.u64.low %v3556_v31, %v1470_v12  ;;  %v3604_v34 = vmul.u32.u64.high %v3556_v31, %v1470_v12, %v3603_v36  ;;  %vm2394_vm5 = vcmp.lt.s32.totalorder %v2393_v17, 0 }
 0x2d8   : > { %v3608_v1 = vmul.u32.u64.low %v3556_v31, %v1474_v37  ;;  %v3609_v54 = vmul.u32.u64.high %v3556_v31, %v1474_v37, %v3608_v1  ;;  %v2399_v46 = vadd.s32 4294967169, %v1535_v24  ;;  %vm1315_vm10 = vcmp.eq.s32.totalorder %v3545_v20, 0 }
 0x2d9   : > { %v1379_v50 = vadd.s32 %v3511_v38, %v3519_v16  ;;  %v1394_v25 = vsel %vm2394_vm5, 0, %v2393_v17  ;;  %v1466_v30 = vsel %vm1460_vm1, %v1463_v29, %v1465_v40  ;;  %vm1318_vm9 = vcmp.eq.s32.totalorder %v3545_v20, 2  ;;  %v3637_v17 = vld [vmem:[%s4227_s0 + $0x2] ss:$0 sm:$0xff] }
 0x2da   : > { %v1395_v44 = vsub.s32 32, %v1394_v25  ;;  %v1399_v39 = vsub.s32 4294967266, %v1394_v25  ;;  %v1541_v62 = vadd.s32 1, %v2399_v46  ;;  %v1416_v63 = vadd.s32 3, %v1412_v41 }
 0x2db   : > { %v2538_v51 = vpop.eup %2537  ;;  %v1485_v11 = vadd.s32 1, %v3604_v34  ;;  %v1531_v3 = vand.u32 2147483647, %v3549_v45  ;;  %v1396_v7 = vshll.u32 %v3570_v57, %v1394_v25  ;;  %v1482_v53 = vmul.u32 %v3556_v31, %v1466_v30 }
 0x2dc   : > { %v2540_v56 = vpop.eup %2539  ;;  %v1319_v49 = vxor.u32 2147483648, %v2538_v51  ;;  %v1397_v38 = vshrl.u32 %v1379_v50, %v1395_v44  ;;  %v1400_v16 = vadd.s32 127, %v1399_v39  ;;  %vm1484_vm8 = vc.u32 %v3609_v54, %v3603_v36 }
 0x2dd   : > { %v1316_v48 = vxor.u32 2147483648, %v2540_v56  ;;  %vm1542_vm11 = vcmp.gt.s32.totalorder %v1541_v62, 0  ;;  %v1486_v18 = vsel %vm1484_vm8, %v1485_v11, %v3604_v34  ;;  %v1538_v57 = vand.u32 8388607, %v1531_v3 }
 0x2de   : > { %v1320_v28 = vsel %vm1318_vm9, %v1319_v49, %v2540_v56  ;;  %v1398_v61 = vor.u32 %v1397_v38, %v1396_v7  ;;  %v1401_v58 = vshll.u32 %v1400_v16, 23  ;;  %v1487_v60 = vadd.s32 %v1486_v18, %v1482_v53 }
 0x2df   : > { %v1317_v43 = vsel %vm1315_vm10, %v2538_v51, %v1316_v48  ;;  %v1543_v27 = vsel %vm1542_vm11, %v1541_v62, 0  ;;  %vm1311_vm12 = vweird.f32 %v3259_v33  ;;  %v546_v24 = vsel %vm535_vm4, %v2781_v2, %v508_v35 }
 0x2e0   : > { %v1321_v31 = vsel %vm1314_vm7, %v1317_v43, %v1320_v28  ;;  %v1402_v26 = vor.u32 4788187, %v1401_v58  ;;  %v1488_v19 = vadd.s32 536870912, %v1487_v60  ;;  %v1545_v42 = vand.u32 31, %v1543_v27 }
 0x2e1   : > { %v1322_v41 = vsel %vm1311_vm12, nan, %v1321_v31  ;;  %v1405_v21 = vcvt.s32.f32 %v1398_v61  ;;  %v3640_v33 = vand.u32 3, %v1416_v63  ;;  %v1539_v40 = vor.u32 8388608, %v1538_v57 }
 0x2e2   : > { %v2269_v29 = vmul.f32 %v3637_v17, %v1322_v41  ;;  %v1403_v12 = vand.u32 2147483647, %v1402_v26  ;;  %v1489_v20 = vshrl.u32 %v1488_v19, 30  ;;  %v1546_v37 = vsub.s32 32, %v1545_v42 }
 0x2e3   : > { %v1544_v1 = vshrl.u32 %v1543_v27, 5  ;;  %v1548_v2 = vshll.u32 %v2596_v55, %v1545_v42  ;;  %v569_v46 = vmul.f32 %v3344_v32, %v546_v24  ;;  %v1551_v44 = vshll.u32 %v2597_v59, %v1545_v42 }
 0x2e4   : > { %2286 = vst.msk [vmem:[%s3099_s29 + $0x30] sm:$0xff] %vm2279_vm6, %v2269_v29  ;;  %v1406_v34 = vmul.f32 %v1405_v21, %v1403_v12  ;;  %v1490_v50 = vshll.u32 %v1489_v20, 30  ;;  %v1549_v25 = vshrl.u32 %v2597_v59, %v1546_v37  ;;  %v1554_v39 = vshll.u32 %v2598_v0, %v1545_v42 }
 0x2e5   : > { %v1552_v62 = vshrl.u32 %v2598_v0, %v1546_v37  ;;  %v1555_v51 = vshrl.u32 %v2599_v4, %v1546_v37  ;;  %v1558_v63 = vshrl.u32 %v2600_v8, %v1546_v37  ;;  %vm1429_vm13 = vcmp.lt.s32.totalorder %v3472_v13, 0 }
 0x2e6   : > { %v1407_v30 = vxor.u32 2147483648, %v1406_v34  ;;  %v3653_v11 = vsub.s32 %v1487_v60, %v1490_v50  ;;  %v1557_v56 = vshll.u32 %v2599_v4, %v1545_v42  ;;  %v1560_v49 = vshll.u32 %v2600_v8, %v1545_v42 }
 0x2e7   : > { %v1561_v7 = vshrl.u32 %v2601_v22, %v1546_v37  ;;  %v1550_v16 = vor.u32 %v1549_v25, %v1548_v2  ;;  %v1553_v48 = vor.u32 %v1552_v62, %v1551_v44  ;;  %v1556_v53 = vor.u32 %v1555_v51, %v1554_v39 }
 0x2e8   : > { %v1408_v38 = vsel %vm1325_vm14, %v1407_v30, %v1406_v34  ;;  %v1493_v61 = vsub.s32 0, %v3653_v11  ;;  %v1559_v58 = vor.u32 %v1558_v63, %v1557_v56  ;;  %v3664_v18 = vshll.u32 %v1539_v40, 8 }
 0x2e9   : > { %v1411_v28 = vsel %vm3560_vm2, %v3368_v14, %v1408_v38  ;;  %v1562_v35 = vor.u32 %v1561_v7, %v1560_v49  ;;  %vm1563_vm3 = vcmp.lt.s32.totalorder %v1544_v1, 1  ;;  %v3667_v43 = vadd.f32 %v3365_v52, %v569_v46 }
 0x2ea   : > { %2541 = vcosq.f32 %v1411_v28  ;;  %v2396_v60 = vmin.u32 %v1493_v61, %v3653_v11  ;;  %v1513_v57 = vsub.s32 4, %v1489_v20  ;;  %vm1566_vm14 = vcmp.lt.s32.totalorder %v1544_v1, 4 }
 0x2eb   : > { %2543 = vsinq.f32 %v1411_v28  ;;  %v1547_v27 = vshrl.u32 %v2596_v55, %v1546_v37  ;;  %v1568_v23 = vsel %vm1566_vm14, %v1556_v53, 2102212464  ;;  %v1571_v31 = vsel %vm1563_vm3, %v1550_v16, %v1553_v48 }
 0x2ec   : > { %v1572_v26 = vsel %vm1566_vm14, %v1559_v58, 920167782  ;;  %v1495_v41 = vclz %v2396_v60  ;;  %vm1564_vm2 = vcmp.lt.s32.totalorder %v1544_v1, 2  ;;  %vm1565_vm0 = vcmp.lt.s32.totalorder %v1544_v1, 3  ;;  %v510_v60 = vpop.permute.xlu1 %509 }
 0x2ed   : > { %v1575_v19 = vsel %vm1563_vm3, %v1553_v48, %v1556_v53  ;;  %v1567_v42 = vsel %vm1563_vm3, %v1547_v27, %v1550_v16  ;;  %v1569_v24 = vsel %vm1565_vm0, %v1553_v48, %v1568_v23  ;;  %v1573_v29 = vsel %vm1565_vm0, %v1556_v53, %v1572_v26 }
 0x2ee   : > { %v1576_v12 = vsel %vm1566_vm14, %v1562_v35, 1326507024  ;;  %vm3673_vm1 = vcmp.le.f32.partialorder %v1427_v47, 0.7853982  ;;  %v2397_v40 = vadd.s32 4294967294, %v1495_v41  ;;  %v1574_v37 = vsel %vm1564_vm2, %v1571_v31, %v1573_v29 }
 0x2ef   : > { %v1577_v34 = vsel %vm1565_vm0, %v1559_v58, %v1576_v12  ;;  %v1514_v2 = vsel %vm1429_vm13, %v1513_v57, %v1489_v20  ;;  %v3682_v50 = vmul.u32.u64.low %v3664_v18, %v1574_v37  ;;  %v3683_v25 = vmul.u32.u64.high %v3664_v18, %v1574_v37, %v3682_v50 }
 0x2f0   : > { %v1578_v46 = vsel %vm1564_vm2, %v1575_v19, %v1577_v34  ;;  %vm1415_vm15 = vweird.f32 %v3368_v14  ;;  %vm2398_vm5 = vcmp.lt.s32.totalorder %v2397_v40, 0  ;;  %v1570_v47 = vsel %vm1564_vm2, %v1567_v42, %v1569_v24 }
 0x2f1   : > { %v3688_v44 = vmul.u32.u64.low %v3664_v18, %v1578_v46  ;;  %v3689_v39 = vmul.u32.u64.high %v3664_v18, %v1578_v46, %v3688_v44  ;;  %vm1419_vm7 = vcmp.eq.s32.totalorder %v3640_v33, 0  ;;  %v1498_v30 = vsel %vm2398_vm5, 0, %v2397_v40 }
 0x2f2   : > { %v1635_v20 = vand.u32 2147483647, %v3667_v43  ;;  %v1638_v62 = vand.u32 2139095040, %v3667_v43  ;;  %vm1422_vm10 = vcmp.eq.s32.totalorder %v3640_v33, 2  ;;  %v1483_v51 = vadd.s32 %v3603_v36, %v3609_v54  ;;  %v512_v44 = vpop.permute.xlu0 %511 }
 0x2f3   : > { %v1499_v63 = vsub.s32 32, %v1498_v30  ;;  %v1503_v56 = vsub.s32 4294967266, %v1498_v30  ;;  %v1516_v49 = vsel %vm3673_vm1, 0, %v1514_v2  ;;  %v1586_v7 = vmul.u32 %v3664_v18, %v1570_v47 }
 0x2f4   : > { %v2542_v1 = vpop.eup %2541  ;;  %v1589_v38 = vadd.s32 1, %v3683_v25  ;;  %v1639_v16 = vshrl.u32 %v1638_v62, 23  ;;  %v1500_v28 = vshll.u32 %v3653_v11, %v1498_v30  ;;  %vm1588_vm9 = vc.u32 %v3689_v39, %v3682_v50 }
 0x2f5   : > { %v2544_v48 = vpop.eup %2543  ;;  %v1423_v53 = vxor.u32 2147483648, %v2542_v1  ;;  %v1501_v61 = vshrl.u32 %v1483_v51, %v1499_v63  ;;  %v1504_v58 = vadd.s32 127, %v1503_v56  ;;  %v1642_v54 = vand.u32 8388607, %v1635_v20 }
 0x2f6   : > { %v1420_v35 = vxor.u32 2147483648, %v2544_v48  ;;  %v2403_v36 = vadd.s32 4294967169, %v1639_v16  ;;  %v1590_v23 = vsel %vm1588_vm9, %v1589_v38, %v3683_v25  ;;  %vm1418_vm8 = vcmp.lt.s32.totalorder %v3640_v33, 2 }
 0x2f7   : > { %v1424_v18 = vsel %vm1422_vm10, %v1423_v53, %v2544_v48  ;;  %v1502_v57 = vor.u32 %v1501_v61, %v1500_v28  ;;  %v1505_v27 = vshll.u32 %v1504_v58, 23  ;;  %v1591_v31 = vadd.s32 %v1590_v23, %v1586_v7 }
 0x2f8   : > { %v1421_v11 = vsel %vm1419_vm7, %v2542_v1, %v1420_v35  ;;  %v1645_v26 = vadd.s32 1, %v2403_v36  ;;  %v1520_v42 = vadd.s32 3, %v1516_v49  ;;  %v547_v24 = vsel %vm535_vm4, %v2784_v5, %v510_v60 }
 0x2f9   : > { %v1425_v41 = vsel %vm1418_vm8, %v1421_v11, %v1424_v18  ;;  %v1506_v19 = vor.u32 4788187, %v1505_v27  ;;  %v1592_v12 = vadd.s32 536870912, %v1591_v31  ;;  %v1643_v40 = vor.u32 8388608, %v1642_v54 }
 0x2fa   : > { %v1426_v29 = vsel %vm1415_vm15, nan, %v1425_v41  ;;  %vm1646_vm11 = vcmp.gt.s32.totalorder %v1645_v26, 0  ;;  %v1509_v33 = vcvt.s32.f32 %v1502_v57  ;;  %v570_v47 = vmul.f32 %v3344_v32, %v547_v24 }
 0x2fb   : > { %v2270_v37 = vmul.f32 %v3637_v17, %v1426_v29  ;;  %v1507_v34 = vand.u32 2147483647, %v1506_v19  ;;  %v1647_v2 = vsel %vm1646_vm11, %v1645_v26, 0  ;;  %v3716_v46 = vshrl.u32 %v1592_v12, 30 }
 0x2fc   : > { %v1649_v25 = vand.u32 31, %v1647_v2  ;;  %v3721_v30 = vand.u32 3, %v1520_v42  ;;  %v3725_v63 = vadd.s32 %v3682_v50, %v3689_v39  ;;  %v3727_v56 = vshll.u32 %v1643_v40, 8 }
 0x2fd   : > { %2287 = vst.msk [vmem:[%s3099_s29 + $0x38] sm:$0xff] %vm2279_vm6, %v2270_v37  ;;  %v1510_v5 = vmul.f32 %v1509_v33, %v1507_v34  ;;  %v1594_v14 = vshll.u32 %v3716_v46, 30  ;;  %v3731_v1 = vsel %vm535_vm4, %v2787_v6, %v512_v44  ;;  %v1648_v49 = vshrl.u32 %v1647_v2, 5 }
 0x2fe   : > { %v1650_v62 = vsub.s32 32, %v1649_v25  ;;  %v3737_v38 = vadd.f32 %v3365_v52, %v570_v47  ;;  %v1652_v50 = vshll.u32 %v2596_v55, %v1649_v25  ;;  %v1655_v28 = vshll.u32 %v2597_v59, %v1649_v25 }
 0x2ff   : > { %v1511_v51 = vxor.u32 2147483648, %v1510_v5  ;;  %v3733_v32 = vsub.s32 %v1591_v31, %v1594_v14  ;;  %v1658_v52 = vshll.u32 %v2598_v0, %v1649_v25  ;;  %vm1533_vm12 = vcmp.lt.s32.totalorder %v3549_v45, 0 }
 0x300   : > { %v1653_v7 = vshrl.u32 %v2597_v59, %v1650_v62  ;;  %v1656_v39 = vshrl.u32 %v2598_v0, %v1650_v62  ;;  %v1659_v48 = vshrl.u32 %v2599_v4, %v1650_v62  ;;  %v1661_v58 = vshll.u32 %v2599_v4, %v1649_v25 }
 0x301   : > { %v1512_v16 = vsel %vm1429_vm13, %v1511_v51, %v1510_v5  ;;  %v1597_v53 = vsub.s32 0, %v3733_v32  ;;  %v1662_v35 = vshrl.u32 %v2600_v8, %v1650_v62  ;;  %v1664_v18 = vshll.u32 %v2600_v8, %v1649_v25 }
 0x302   : > { %v1515_v6 = vsel %vm3673_vm1, %v3472_v13, %v1512_v16  ;;  %v1654_v61 = vor.u32 %v1653_v7, %v1652_v50  ;;  %v1657_v54 = vor.u32 %v1656_v39, %v1655_v28  ;;  %v1660_v21 = vor.u32 %v1659_v48, %v1658_v52 }
 0x303   : > { %2545 = vcosq.f32 %v1515_v6  ;;  %v2400_v36 = vmin.u32 %v1597_v53, %v3733_v32  ;;  %v1663_v60 = vor.u32 %v1662_v35, %v1661_v58  ;;  %v1665_v57 = vshrl.u32 %v2601_v22, %v1650_v62 }
 0x304   : > { %2547 = vsinq.f32 %v1515_v6  ;;  %v1742_v27 = vand.u32 2139095040, %v3737_v38  ;;  %v1617_v11 = vsub.s32 4, %v3716_v46  ;;  %v1651_v31 = vshrl.u32 %v2596_v55, %v1650_v62 }
 0x305   : > { %v1599_v23 = vclz %v2400_v36  ;;  %vm1667_vm13 = vcmp.lt.s32.totalorder %v1648_v49, 1  ;;  %vm1526_vm3 = vcmp.eq.s32.totalorder %v3721_v30, 2  ;;  %vm3762_vm14 = vcmp.le.f32.partialorder %v1531_v3, 0.7853982 }
 0x306   : > { %v1666_v41 = vor.u32 %v1665_v57, %v1664_v18  ;;  %vm1668_vm2 = vcmp.lt.s32.totalorder %v1648_v49, 2  ;;  %vm1669_vm0 = vcmp.lt.s32.totalorder %v1648_v49, 3  ;;  %vm1670_vm1 = vcmp.lt.s32.totalorder %v1648_v49, 4  ;;  %v3794_v49 = vld [vmem:[%s4227_s0] ss:$0 sm:$0xff] }
 0x307   : > { %vm1523_vm15 = vcmp.eq.s32.totalorder %v3721_v30, 0  ;;  %v2401_v19 = vadd.s32 4294967294, %v1599_v23  ;;  %v1672_v42 = vsel %vm1670_vm1, %v1660_v21, 2102212464  ;;  %v1675_v24 = vsel %vm1667_vm13, %v1654_v61, %v1657_v54 }
 0x308   : > { %v1676_v29 = vsel %vm1670_vm1, %v1663_v60, 920167782  ;;  %vm1522_vm5 = vcmp.lt.s32.totalorder %v3721_v30, 2  ;;  %v1671_v12 = vsel %vm1667_vm13, %v1651_v31, %v1654_v61  ;;  %v1679_v37 = vsel %vm1667_vm13, %v1657_v54, %v1660_v21 }
 0x309   : > { %v1677_v40 = vsel %vm1669_vm0, %v1660_v21, %v1676_v29  ;;  %v1680_v3 = vsel %vm1670_vm1, %v1666_v41, 1326507024  ;;  %vm1519_vm7 = vweird.f32 %v3472_v13  ;;  %vm2402_vm10 = vcmp.lt.s32.totalorder %v2401_v19, 0 }
 0x30a   : > { %v1673_v34 = vsel %vm1669_vm0, %v1657_v54, %v1672_v42  ;;  %v1678_v33 = vsel %vm1668_vm2, %v1675_v24, %v1677_v40  ;;  %v1681_v2 = vsel %vm1669_vm0, %v1663_v60, %v1680_v3  ;;  %v1602_v25 = vsel %vm2402_vm10, 0, %v2401_v19 }
 0x30b   : > { %v1682_v47 = vsel %vm1668_vm2, %v1679_v37, %v1681_v2  ;;  %v3775_v44 = vmul.u32.u64.low %v3727_v56, %v1678_v33  ;;  %v3776_v5 = vmul.u32.u64.high %v3727_v56, %v1678_v33, %v3775_v44  ;;  %v1603_v14 = vsub.s32 32, %v1602_v25 }
 0x30c   : > { %v1607_v62 = vsub.s32 4294967266, %v1602_v25  ;;  %v1618_v51 = vsel %vm1533_vm12, %v1617_v11, %v3716_v46  ;;  %v1739_v7 = vand.u32 2147483647, %v3737_v38  ;;  %v1674_v50 = vsel %vm1668_vm2, %v1671_v12, %v1673_v34 }
 0x30d   : > { %v2546_v16 = vpop.eup %2545  ;;  %v3785_v39 = vmul.u32.u64.low %v3727_v56, %v1682_v47  ;;  %v3786_v48 = vmul.u32.u64.high %v3727_v56, %v1682_v47, %v3785_v39  ;;  %v1743_v6 = vshrl.u32 %v1742_v27, 23  ;;  %v1604_v52 = vshll.u32 %v3733_v32, %v1602_v25  ;;  %v3825_v47 = vld [vmem:[%s4227_s0 + $0x1] ss:$0 sm:$0xff] }
 0x30e   : > { %v2548_v53 = vpop.eup %2547  ;;  %v1527_v28 = vxor.u32 2147483648, %v2546_v16  ;;  %v1605_v61 = vshrl.u32 %v3725_v63, %v1603_v14  ;;  %v1608_v58 = vadd.s32 127, %v1607_v62  ;;  %v1693_v46 = vadd.s32 1, %v3776_v5 }
 0x30f   : > { %v1524_v35 = vxor.u32 2147483648, %v2548_v53  ;;  %v2407_v36 = vadd.s32 4294967169, %v1743_v6  ;;  %v571_v54 = vmul.f32 %v3794_v49, %v3731_v1  ;;  %v1620_v63 = vsel %vm3762_vm14, 0, %v1618_v51 }
 0x310   : > { %v1528_v21 = vsel %vm1526_vm3, %v1527_v28, %v2548_v53  ;;  %v1606_v60 = vor.u32 %v1605_v61, %v1604_v52  ;;  %v1609_v32 = vshll.u32 %v1608_v58, 23  ;;  %v1690_v57 = vmul.u32 %v3727_v56, %v1674_v50 }
 0x311   : > { %v1525_v18 = vsel %vm1523_vm15, %v2546_v16, %v1524_v35  ;;  %vm1692_vm9 = vc.u32 %v3786_v48, %v3775_v44  ;;  %v1749_v27 = vadd.s32 1, %v2407_v36  ;;  %v1746_v31 = vand.u32 8388607, %v1739_v7 }
 0x312   : > { %v1529_v1 = vsel %vm1522_vm5, %v1525_v18, %v1528_v21  ;;  %v1610_v23 = vor.u32 4788187, %v1609_v32  ;;  %v1694_v11 = vsel %vm1692_vm9, %v1693_v46, %v3776_v5  ;;  %v1624_v19 = vadd.s32 3, %v1620_v63 }
 0x313   : > { %v1530_v41 = vsel %vm1519_vm7, nan, %v1529_v1  ;;  %v1695_v42 = vadd.s32 %v1694_v11, %v1690_v57  ;;  %vm1750_vm8 = vcmp.gt.s32.totalorder %v1749_v27, 0  ;;  %v1613_v29 = vcvt.s32.f32 %v1606_v60 }
 0x314   : > { %v2271_v56 = vmul.f32 %v3637_v17, %v1530_v41  ;;  %v1611_v24 = vand.u32 2147483647, %v1610_v23  ;;  %v1751_v12 = vsel %vm1750_vm8, %v1749_v27, 0  ;;  %v3817_v3 = vand.u32 3, %v1624_v19 }
 0x315   : > { %v1696_v40 = vadd.s32 536870912, %v1695_v42  ;;  %v1753_v30 = vand.u32 31, %v1751_v12  ;;  %vm1637_vm11 = vcmp.lt.s32.totalorder %v3667_v43, 0  ;;  %v1747_v13 = vor.u32 8388608, %v1746_v31 }
 0x316   : > { %2288 = vst.msk [vmem:[%s3099_s29 + $0x40] sm:$0xff] %vm2279_vm6, %v2271_v56  ;;  %v1614_v37 = vmul.f32 %v1613_v29, %v1611_v24  ;;  %v3820_v25 = vshrl.u32 %v1751_v12, 5  ;;  %v3828_v5 = vadd.f32 %v3825_v47, %v571_v54  ;;  %vm1627_vm2 = vcmp.eq.s32.totalorder %v3817_v3, 0 }
 0x317   : > { %v1697_v34 = vshrl.u32 %v1696_v40, 30  ;;  %v1754_v33 = vsub.s32 32, %v1753_v30  ;;  %v1756_v62 = vshll.u32 %v2596_v55, %v1753_v30  ;;  %v1759_v16 = vshll.u32 %v2597_v59, %v1753_v30 }
 0x318   : > { %v1615_v2 = vxor.u32 2147483648, %v1614_v37  ;;  %v1762_v61 = vshll.u32 %v2598_v0, %v1753_v30  ;;  %v1765_v58 = vshll.u32 %v2599_v4, %v1753_v30  ;;  %v1768_v32 = vshll.u32 %v2600_v8, %v1753_v30 }
 0x319   : > { %v1698_v14 = vshll.u32 %v1697_v34, 30  ;;  %v1757_v51 = vshrl.u32 %v2597_v59, %v1754_v33  ;;  %v1760_v39 = vshrl.u32 %v2598_v0, %v1754_v33  ;;  %v1763_v6 = vshrl.u32 %v2599_v4, %v1754_v33 }
 0x31a   : > { %v1616_v50 = vsel %vm1533_vm12, %v1615_v2, %v1614_v37  ;;  %v1766_v53 = vshrl.u32 %v2600_v8, %v1754_v33  ;;  %v1721_v35 = vsub.s32 4, %v1697_v34  ;;  %v1769_v26 = vshrl.u32 %v2601_v22, %v1754_v33 }
 0x31b   : > { %v1619_v28 = vsel %vm3762_vm14, %v3549_v45, %v1616_v50  ;;  %v3841_v52 = vsub.s32 %v1695_v42, %v1698_v14  ;;  %v1758_v46 = vor.u32 %v1757_v51, %v1756_v62  ;;  %v1761_v36 = vor.u32 %v1760_v39, %v1759_v16 }
 0x31c   : > { %2549 = vcosq.f32 %v1619_v28  ;;  %v1764_v21 = vor.u32 %v1763_v6, %v1762_v61  ;;  %v1767_v60 = vor.u32 %v1766_v53, %v1765_v58  ;;  %v3848_v63 = vshll.u32 %v1747_v13, 8 }
 0x31d   : > { %2551 = vsinq.f32 %v1619_v28  ;;  %v1701_v54 = vsub.s32 0, %v3841_v52  ;;  %v1843_v18 = vand.u32 2147483647, %v3828_v5  ;;  %vm3853_vm12 = vcmp.le.f32.partialorder %v1635_v20, 0.7853982 }
 0x31e   : > { %vm1771_vm13 = vcmp.lt.s32.totalorder %v3820_v25, 1  ;;  %vm1774_vm3 = vcmp.lt.s32.totalorder %v3820_v25, 4  ;;  %v1846_v1 = vand.u32 2139095040, %v3828_v5  ;;  %vm1630_vm14 = vcmp.eq.s32.totalorder %v3817_v3, 2 }
 0x31f   : > { %v2404_v27 = vmin.u32 %v1701_v54, %v3841_v52  ;;  %v1755_v23 = vshrl.u32 %v2596_v55, %v1754_v33  ;;  %v1770_v11 = vor.u32 %v1769_v26, %v1768_v32  ;;  %v1779_v31 = vsel %vm1771_vm13, %v1758_v46, %v1761_v36 }
 0x320   : > { %v1780_v20 = vsel %vm1774_vm3, %v1767_v60, 920167782  ;;  %v1722_v19 = vsel %vm1637_vm11, %v1721_v35, %v1697_v34  ;;  %vm1773_vm0 = vcmp.lt.s32.totalorder %v3820_v25, 3  ;;  %v1776_v42 = vsel %vm1774_vm3, %v1764_v21, 2102212464  ;;  %v514_v34 = vpop.permute.xlu1 %513 }
 0x321   : > { %v1703_v41 = vclz %v2404_v27  ;;  %vm1626_vm1 = vcmp.lt.s32.totalorder %v3817_v3, 2  ;;  %vm1772_vm15 = vcmp.lt.s32.totalorder %v3820_v25, 2  ;;  %v1781_v56 = vsel %vm1773_vm0, %v1764_v21, %v1780_v20 }
 0x322   : > { %v1783_v24 = vsel %vm1771_vm13, %v1761_v36, %v1764_v21  ;;  %v1784_v29 = vsel %vm1774_vm3, %v1770_v11, 1326507024  ;;  %vm1623_vm5 = vweird.f32 %v3549_v45  ;;  %v1775_v40 = vsel %vm1771_vm13, %v1755_v23, %v1758_v46 }
 0x323   : > { %v2405_v12 = vadd.s32 4294967294, %v1703_v41  ;;  %v1782_v30 = vsel %vm1772_vm15, %v1779_v31, %v1781_v56  ;;  %v1785_v37 = vsel %vm1773_vm0, %v1767_v60, %v1784_v29  ;;  %v1777_v33 = vsel %vm1773_vm0, %v1761_v36, %v1776_v42 }
 0x324   : > { %v1786_v2 = vsel %vm1772_vm15, %v1783_v24, %v1785_v37  ;;  %v3887_v13 = vmul.u32.u64.low %v3848_v63, %v1782_v30  ;;  %v3888_v14 = vmul.u32.u64.high %v3848_v63, %v1782_v30, %v3887_v13  ;;  %v1847_v16 = vshrl.u32 %v1846_v1, 23 }
 0x325   : > { %vm2406_vm7 = vcmp.lt.s32.totalorder %v2405_v12, 0  ;;  %v3892_v62 = vmul.u32.u64.low %v3848_v63, %v1786_v2  ;;  %v3893_v51 = vmul.u32.u64.high %v3848_v63, %v1786_v2, %v3892_v62  ;;  %v1691_v39 = vadd.s32 %v3775_v44, %v3786_v48 }
 0x326   : > { %v2550_v50 = vpop.eup %2549  ;;  %v1706_v6 = vsel %vm2406_vm7, 0, %v2405_v12  ;;  %v3899_v53 = vand.u32 8388607, %v1843_v18  ;;  %v549_v28 = vsel %vm535_vm4, %v2790_v9, %v514_v34  ;;  %v1778_v36 = vsel %vm1772_vm15, %v1775_v40, %v1777_v33 }
 0x327   : > { %v2552_v61 = vpop.eup %2551  ;;  %v1631_v58 = vxor.u32 2147483648, %v2550_v50  ;;  %v1707_v35 = vsub.s32 32, %v1706_v6  ;;  %v1711_v46 = vsub.s32 4294967266, %v1706_v6  ;;  %v1724_v21 = vsel %vm3853_vm12, 0, %v1722_v19 }
 0x328   : > { %v1628_v54 = vxor.u32 2147483648, %v2552_v61  ;;  %v1797_v44 = vadd.s32 1, %v3888_v14  ;;  %v2411_v48 = vadd.s32 4294967169, %v1847_v16  ;;  %v1708_v32 = vshll.u32 %v3841_v52, %v1706_v6 }
 0x329   : > { %v1632_v60 = vsel %vm1630_vm14, %v1631_v58, %v2552_v61  ;;  %v1709_v9 = vshrl.u32 %v1691_v39, %v1707_v35  ;;  %v1712_v26 = vadd.s32 127, %v1711_v46  ;;  %v1794_v25 = vmul.u32 %v3848_v63, %v1778_v36 }
 0x32a   : > { %v1629_v27 = vsel %vm1627_vm2, %v2550_v50, %v1628_v54  ;;  %vm1796_vm10 = vc.u32 %v3893_v51, %v3887_v13  ;;  %v1853_v1 = vadd.s32 1, %v2411_v48  ;;  %v1728_v41 = vadd.s32 3, %v1724_v21 }
 0x32b   : > { %v1633_v23 = vsel %vm1626_vm1, %v1629_v27, %v1632_v60  ;;  %v1710_v11 = vor.u32 %v1709_v9, %v1708_v32  ;;  %v1713_v31 = vshll.u32 %v1712_v26, 23  ;;  %v1798_v20 = vsel %vm1796_vm10, %v1797_v44, %v3888_v14 }
 0x32c   : > { %v1634_v52 = vsel %vm1623_vm5, nan, %v1633_v23  ;;  %v1799_v19 = vadd.s32 %v1798_v20, %v1794_v25  ;;  %vm1854_vm9 = vcmp.gt.s32.totalorder %v1853_v1, 0  ;;  %v572_v24 = vmul.f32 %v3794_v49, %v549_v28 }
 0x32d   : > { %v2272_v63 = vmul.f32 %v3637_v17, %v1634_v52  ;;  %v1714_v42 = vor.u32 4788187, %v1713_v31  ;;  %v1855_v56 = vsel %vm1854_vm9, %v1853_v1, 0  ;;  %v1717_v40 = vcvt.s32.f32 %v1710_v11 }
 0x32e   : > { %v1800_v29 = vadd.s32 536870912, %v1799_v19  ;;  %v1857_v12 = vand.u32 31, %v1855_v56  ;;  %v3925_v45 = vand.u32 3, %v1728_v41  ;;  %v1851_v33 = vor.u32 8388608, %v3899_v53 }
 0x32f   : > { %2289 = vst.msk [vmem:[%s3099_s29 + $0x48] sm:$0xff] %vm2279_vm6, %v2272_v63  ;;  %v1715_v3 = vand.u32 2147483647, %v1714_v42  ;;  %v3929_v2 = vadd.f32 %v3825_v47, %v572_v24  ;;  %v1856_v62 = vshrl.u32 %v1855_v56, 5  ;;  %vm1741_vm8 = vcmp.lt.s32.totalorder %v3737_v38, 0 }
 0x330   : > { %v1801_v30 = vshrl.u32 %v1800_v29, 30  ;;  %v1858_v37 = vsub.s32 32, %v1857_v12  ;;  %v1860_v16 = vshll.u32 %v2596_v55, %v1857_v12  ;;  %v1863_v53 = vshll.u32 %v2597_v59, %v1857_v12 }
 0x331   : > { %v1718_v34 = vmul.f32 %v1717_v40, %v1715_v3  ;;  %v1866_v35 = vshll.u32 %v2598_v0, %v1857_v12  ;;  %v1869_v21 = vshll.u32 %v2599_v4, %v1857_v12  ;;  %v1872_v44 = vshll.u32 %v2600_v8, %v1857_v12 }
 0x332   : > { %v1802_v14 = vshll.u32 %v1801_v30, 30  ;;  %v1861_v50 = vshrl.u32 %v2597_v59, %v1858_v37  ;;  %v1864_v6 = vshrl.u32 %v2598_v0, %v1858_v37  ;;  %v1867_v28 = vshrl.u32 %v2599_v4, %v1858_v37 }
 0x333   : > { %v1719_v39 = vxor.u32 2147483648, %v1718_v34  ;;  %v1870_v61 = vshrl.u32 %v2600_v8, %v1858_v37  ;;  %v1873_v46 = vshrl.u32 %v2601_v22, %v1858_v37  ;;  %v3950_v25 = vshll.u32 %v1851_v33, 8 }
 0x334   : > { %v3937_v58 = vsub.s32 %v1799_v19, %v1802_v14  ;;  %v1862_v54 = vor.u32 %v1861_v50, %v1860_v16  ;;  %v1865_v32 = vor.u32 %v1864_v6, %v1863_v53  ;;  %v1868_v9 = vor.u32 %v1867_v28, %v1866_v35 }
 0x335   : > { %v1720_v36 = vsel %vm1637_vm11, %v1719_v39, %v1718_v34  ;;  %v1871_v26 = vor.u32 %v1870_v61, %v1869_v21  ;;  %v1874_v27 = vor.u32 %v1873_v46, %v1872_v44  ;;  %vm3954_vm11 = vcmp.le.f32.partialorder %v1739_v7, 0.7853982 }
 0x336   : > { %v1723_v48 = vsel %vm3853_vm12, %v3667_v43, %v1720_v36  ;;  %v1805_v60 = vsub.s32 0, %v3937_v58  ;;  %v1825_v57 = vsub.s32 4, %v1801_v30  ;;  %v1950_v11 = vand.u32 2139095040, %v3929_v2 }
 0x337   : > { %2553 = vcosq.f32 %v1723_v48  ;;  %v1859_v31 = vshrl.u32 %v2596_v55, %v1858_v37  ;;  %vm1875_vm12 = vcmp.lt.s32.totalorder %v1856_v62, 1  ;;  %vm1876_vm13 = vcmp.lt.s32.totalorder %v1856_v62, 2 }
 0x338   : > { %2555 = vsinq.f32 %v1723_v48  ;;  %v2408_v23 = vmin.u32 %v1805_v60, %v3937_v58  ;;  %vm1877_vm3 = vcmp.lt.s32.totalorder %v1856_v62, 3  ;;  %vm1878_vm14 = vcmp.lt.s32.totalorder %v1856_v62, 4 }
 0x339   : > { %v1883_v52 = vsel %vm1875_vm12, %v1862_v54, %v1865_v32  ;;  %v1887_v41 = vsel %vm1875_vm12, %v1865_v32, %v1868_v9  ;;  %v1879_v19 = vsel %vm1875_vm12, %v1859_v31, %v1862_v54  ;;  %v1880_v63 = vsel %vm1878_vm14, %v1868_v9, 2102212464 }
 0x33a   : > { %v1807_v20 = vclz %v2408_v23  ;;  %v1884_v7 = vsel %vm1878_vm14, %v1871_v26, 920167782  ;;  %v1888_v42 = vsel %vm1878_vm14, %v1874_v27, 1326507024  ;;  %vm1731_vm2 = vcmp.eq.s32.totalorder %v3925_v45, 0 }
 0x33b   : > { %v1881_v24 = vsel %vm1877_vm3, %v1865_v32, %v1880_v63  ;;  %v1885_v29 = vsel %vm1877_vm3, %v1868_v9, %v1884_v7  ;;  %v1889_v12 = vsel %vm1877_vm3, %v1871_v26, %v1888_v42  ;;  %v1826_v3 = vsel %vm1741_vm8, %v1825_v57, %v1801_v30 }
 0x33c   : > { %v2409_v56 = vadd.s32 4294967294, %v1807_v20  ;;  %v1886_v40 = vsel %vm1876_vm13, %v1883_v52, %v1885_v29  ;;  %v1890_v37 = vsel %vm1876_vm13, %v1887_v41, %v1889_v12  ;;  %v1951_v34 = vshrl.u32 %v1950_v11, 23 }
 0x33d   : > { %v1882_v33 = vsel %vm1876_vm13, %v1879_v19, %v1881_v24  ;;  %v3968_v14 = vmul.u32.u64.low %v3950_v25, %v1890_v37  ;;  %v3969_v16 = vmul.u32.u64.high %v3950_v25, %v1890_v37, %v3968_v14  ;;  %vm1734_vm1 = vcmp.eq.s32.totalorder %v3925_v45, 2  ;;  %v516_v24 = vpop.permute.xlu0 %515 }
 0x33e   : > { %vm2410_vm0 = vcmp.lt.s32.totalorder %v2409_v56, 0  ;;  %v3972_v39 = vmul.u32.u64.low %v3950_v25, %v1886_v40  ;;  %v3973_v6 = vmul.u32.u64.high %v3950_v25, %v1886_v40, %v3972_v39  ;;  %v2415_v28 = vadd.s32 4294967169, %v1951_v34 }
 0x33f   : > { %v1810_v50 = vsel %vm2410_vm0, 0, %v2409_v56  ;;  %v1795_v30 = vadd.s32 %v3887_v13, %v3893_v51  ;;  %v1828_v35 = vsel %vm3954_vm11, 0, %v1826_v3  ;;  %v1898_v46 = vmul.u32 %v3950_v25, %v1882_v33 }
 0x340   : > { %v1811_v61 = vsub.s32 32, %v1810_v50  ;;  %v1815_v53 = vsub.s32 4294967266, %v1810_v50  ;;  %v1947_v36 = vand.u32 2147483647, %v3929_v2  ;;  %v1957_v54 = vadd.s32 1, %v2415_v28 }
 0x341   : > { %v2554_v62 = vpop.eup %2553  ;;  %v1812_v48 = vshll.u32 %v3937_v58, %v1810_v50  ;;  %vm1900_vm15 = vc.u32 %v3969_v16, %v3972_v39  ;;  %v1901_v13 = vadd.s32 1, %v3973_v6  ;;  %vm1730_vm7 = vcmp.lt.s32.totalorder %v3925_v45, 2 }
 0x342   : > { %v2556_v21 = vpop.eup %2555  ;;  %v1735_v44 = vxor.u32 2147483648, %v2554_v62  ;;  %v1813_v60 = vshrl.u32 %v1795_v30, %v1811_v61  ;;  %v1816_v32 = vadd.s32 127, %v1815_v53  ;;  %vm1958_vm5 = vcmp.gt.s32.totalorder %v1957_v54, 0 }
 0x343   : > { %v1732_v9 = vxor.u32 2147483648, %v2556_v21  ;;  %v1959_v25 = vsel %vm1958_vm5, %v1957_v54, 0  ;;  %v1902_v23 = vsel %vm1900_vm15, %v1901_v13, %v3973_v6  ;;  %vm1727_vm10 = vweird.f32 %v3667_v43 }
 0x344   : > { %v1736_v51 = vsel %vm1734_vm1, %v1735_v44, %v2556_v21  ;;  %v1814_v26 = vor.u32 %v1813_v60, %v1812_v48  ;;  %v1817_v27 = vshll.u32 %v1816_v32, 23  ;;  %v1961_v57 = vand.u32 31, %v1959_v25 }
 0x345   : > { %v1733_v58 = vsel %vm1731_vm2, %v2554_v62, %v1732_v9  ;;  %v1903_v20 = vadd.s32 %v1902_v23, %v1898_v46  ;;  %v1832_v41 = vadd.s32 3, %v1828_v35  ;;  %v1954_v19 = vand.u32 8388607, %v1947_v36 }
 0x346   : > { %v1737_v11 = vsel %vm1730_vm7, %v1733_v58, %v1736_v51  ;;  %v1818_v31 = vor.u32 4788187, %v1817_v27  ;;  %v1962_v63 = vsub.s32 32, %v1961_v57  ;;  %v1821_v45 = vcvt.s32.f32 %v1814_v26 }
 0x347   : > { %v1738_v52 = vsel %vm1727_vm10, nan, %v1737_v11  ;;  %v1904_v56 = vadd.s32 536870912, %v1903_v20  ;;  %v1964_v29 = vshll.u32 %v2596_v55, %v1961_v57  ;;  %v1967_v34 = vshll.u32 %v2597_v59, %v1961_v57 }
 0x348   : > { %v2273_v7 = vmul.f32 %v3637_v17, %v1738_v52  ;;  %v1819_v42 = vand.u32 2147483647, %v1818_v31  ;;  %v1965_v43 = vshrl.u32 %v2597_v59, %v1962_v63  ;;  %v1968_v12 = vshrl.u32 %v2598_v0, %v1962_v63 }
 0x349   : > { %v1971_v3 = vshrl.u32 %v2599_v4, %v1962_v63  ;;  %v4003_v37 = vshrl.u32 %v1904_v56, 30  ;;  %v1974_v17 = vshrl.u32 %v2600_v8, %v1962_v63  ;;  %v1960_v33 = vshrl.u32 %v1959_v25, 5 }
 0x34a   : > { %2290 = vst.msk [vmem:[%s3099_s29 + $0x50] sm:$0xff] %vm2279_vm6, %v2273_v7  ;;  %v1822_v40 = vmul.f32 %v1821_v45, %v1819_v42  ;;  %v1970_v14 = vshll.u32 %v2598_v0, %v1961_v57  ;;  %v1973_v50 = vshll.u32 %v2599_v4, %v1961_v57  ;;  %v550_v6 = vsel %vm535_vm4, %v2793_v10, %v516_v24 }
 0x34b   : > { %v1906_v30 = vshll.u32 %v4003_v37, 30  ;;  %v1966_v61 = vor.u32 %v1965_v43, %v1964_v29  ;;  %v1969_v53 = vor.u32 %v1968_v12, %v1967_v34  ;;  %v1976_v46 = vshll.u32 %v2600_v8, %v1961_v57  ;;  %v518_v29 = vpop.permute.xlu1 %517 }
 0x34c   : > { %v1823_v28 = vxor.u32 2147483648, %v1822_v40  ;;  %v1972_v62 = vor.u32 %v1971_v3, %v1970_v14  ;;  %v1975_v35 = vor.u32 %v1974_v17, %v1973_v50  ;;  %v1977_v54 = vshrl.u32 %v2601_v22, %v1962_v63 }
 0x34d   : > { %v4016_v44 = vand.u32 3, %v1832_v41  ;;  %v4018_v48 = vsub.s32 %v1903_v20, %v1906_v30  ;;  %v1955_v60 = vor.u32 8388608, %v1954_v19  ;;  %vm1979_vm9 = vcmp.lt.s32.totalorder %v1960_v33, 1 }
 0x34e   : > { %v1824_v21 = vsel %vm1741_vm8, %v1823_v28, %v1822_v40  ;;  %v1978_v32 = vor.u32 %v1977_v54, %v1976_v46  ;;  %v573_v9 = vmul.f32 %v3794_v49, %v550_v6  ;;  %vm1981_vm12 = vcmp.lt.s32.totalorder %v1960_v33, 3 }
 0x34f   : > { %v1827_v10 = vsel %vm3954_vm11, %v3737_v38, %v1824_v21  ;;  %v1909_v13 = vsub.s32 0, %v4018_v48  ;;  %vm1982_vm13 = vcmp.lt.s32.totalorder %v1960_v33, 4  ;;  %v1987_v26 = vsel %vm1979_vm9, %v1966_v61, %v1969_v53 }
 0x350   : > { %2557 = vcosq.f32 %v1827_v10  ;;  %v1984_v51 = vsel %vm1982_vm13, %v1972_v62, 2102212464  ;;  %v1988_v27 = vsel %vm1982_vm13, %v1975_v35, 920167782  ;;  %v1963_v58 = vshrl.u32 %v2596_v55, %v1962_v63 }
 0x351   : > { %2559 = vsinq.f32 %v1827_v10  ;;  %v2412_v25 = vmin.u32 %v1909_v13, %v4018_v48  ;;  %vm1980_vm8 = vcmp.lt.s32.totalorder %v1960_v33, 2  ;;  %v1989_v1 = vsel %vm1981_vm12, %v1972_v62, %v1988_v27 }
 0x352   : > { %v1990_v23 = vsel %vm1980_vm8, %v1987_v26, %v1989_v1  ;;  %v1991_v57 = vsel %vm1979_vm9, %v1969_v53, %v1972_v62  ;;  %v1992_v11 = vsel %vm1982_vm13, %v1978_v32, 1326507024  ;;  %v1995_v31 = vshll.u32 %v1955_v60, 8 }
 0x353   : > { %vm4033_vm11 = vcmp.le.f32.partialorder %v1843_v18, 0.7853982  ;;  %v1911_v52 = vclz %v2412_v25  ;;  %v1983_v41 = vsel %vm1979_vm9, %v1963_v58, %v1966_v61  ;;  %v1985_v19 = vsel %vm1981_vm12, %v1969_v53, %v1984_v51 }
 0x354   : > { %vm1845_vm3 = vcmp.lt.s32.totalorder %v3828_v5, 0  ;;  %v1993_v63 = vsel %vm1981_vm12, %v1975_v35, %v1992_v11  ;;  %v4041_v7 = vmul.u32.u64.low %v1995_v31, %v1990_v23  ;;  %v4042_v42 = vmul.u32.u64.high %v1995_v31, %v1990_v23, %v4041_v7  ;;  %v4081_v23 = vld [vmem:[%s4227_s0 + $0x2] ss:$0 sm:$0xff] }
 0x355   : > { %v2413_v45 = vadd.s32 4294967294, %v1911_v52  ;;  %v1929_v56 = vsub.s32 4, %v4003_v37  ;;  %v1994_v18 = vsel %vm1980_vm8, %v1991_v57, %v1993_v63  ;;  %v4047_v24 = vadd.f32 %v3825_v47, %v573_v9 }
 0x356   : > { %vm1834_vm14 = vcmp.lt.s32.totalorder %v4016_v44, 2  ;;  %v1986_v43 = vsel %vm1980_vm8, %v1983_v41, %v1985_v19  ;;  %v4051_v12 = vmul.u32.u64.low %v1995_v31, %v1994_v18  ;;  %v4052_v3 = vmul.u32.u64.high %v1995_v31, %v1994_v18, %v4051_v12 }
 0x357   : > { %vm1835_vm2 = vcmp.eq.s32.totalorder %v4016_v44, 0  ;;  %vm1838_vm0 = vcmp.eq.s32.totalorder %v4016_v44, 2  ;;  %vm2414_vm1 = vcmp.lt.s32.totalorder %v2413_v45, 0  ;;  %v2054_v40 = vand.u32 2139095040, %v4047_v24 }
 0x358   : > { %v1899_v34 = vadd.s32 %v3972_v39, %v3969_v16  ;;  %v1914_v17 = vsel %vm2414_vm1, 0, %v2413_v45  ;;  %v2005_v14 = vadd.s32 1, %v4042_v42  ;;  %v551_v33 = vsel %vm535_vm4, %v2803_v15, %v518_v29 }
 0x359   : > { %v1915_v6 = vsub.s32 32, %v1914_v17  ;;  %v1919_v28 = vsub.s32 4294967266, %v1914_v17  ;;  %v1930_v30 = vsel %vm1845_vm3, %v1929_v56, %v4003_v37  ;;  %v2002_v61 = vmul.u32 %v1995_v31, %v1986_v43 }
 0x35a   : > { %v2558_v50 = vpop.eup %2557  ;;  %v1916_v35 = vshll.u32 %v4018_v48, %v1914_v17  ;;  %vm2004_vm15 = vc.u32 %v4052_v3, %v4041_v7  ;;  %v2055_v16 = vshrl.u32 %v2054_v40, 23  ;;  %v1932_v60 = vsel %vm4033_vm11, 0, %v1930_v30 }
 0x35b   : > { %v2560_v53 = vpop.eup %2559  ;;  %v1839_v62 = vxor.u32 2147483648, %v2558_v50  ;;  %v1917_v46 = vshrl.u32 %v1899_v34, %v1915_v6  ;;  %v1920_v54 = vadd.s32 127, %v1919_v28  ;;  %v2006_v15 = vsel %vm2004_vm15, %v2005_v14, %v4042_v42 }
 0x35c   : > { %v1836_v39 = vxor.u32 2147483648, %v2560_v53  ;;  %v2007_v37 = vadd.s32 %v2006_v15, %v2002_v61  ;;  %v2419_v10 = vadd.s32 4294967169, %v2055_v16  ;;  %v574_v13 = vmul.f32 %v3794_v49, %v551_v33 }
 0x35d   : > { %v1840_v21 = vsel %vm1838_vm0, %v1839_v62, %v2560_v53  ;;  %v1918_v48 = vor.u32 %v1917_v46, %v1916_v35  ;;  %v1921_v9 = vshll.u32 %v1920_v54, 23  ;;  %vm1831_vm4 = vweird.f32 %v3737_v38 }
 0x35e   : > { %v1837_v32 = vsel %vm1835_vm2, %v2558_v50, %v1836_v39  ;;  %v2008_v26 = vadd.s32 536870912, %v2007_v37  ;;  %v2061_v27 = vadd.s32 1, %v2419_v10  ;;  %v1936_v1 = vadd.s32 3, %v1932_v60 }
 0x35f   : > { %v1841_v51 = vsel %vm1834_vm14, %v1837_v32, %v1840_v21  ;;  %v1922_v58 = vor.u32 4788187, %v1921_v9  ;;  %v2051_v38 = vand.u32 2147483647, %v4047_v24  ;;  %v1925_v44 = vcvt.s32.f32 %v1918_v48 }
 0x360   : > { %v1842_v25 = vsel %vm1831_vm4, nan, %v1841_v51  ;;  %v4084_v11 = vshrl.u32 %v2008_v26, 30  ;;  %vm2062_vm5 = vcmp.gt.s32.totalorder %v2061_v27, 0  ;;  %v4088_v52 = vadd.f32 %v3825_v47, %v574_v13 }
 0x361   : > { %v2274_v57 = vmul.f32 %v4081_v23, %v1842_v25  ;;  %v1923_v49 = vand.u32 2147483647, %v1922_v58  ;;  %v2063_v31 = vsel %vm2062_vm5, %v2061_v27, 0  ;;  %v4093_v42 = vand.u32 3, %v1936_v1 }
 0x362   : > { %v2010_v41 = vshll.u32 %v4084_v11, 30  ;;  %v2065_v19 = vand.u32 31, %v2063_v31  ;;  %v2003_v45 = vadd.s32 %v4041_v7, %v4052_v3  ;;  %v2058_v43 = vand.u32 8388607, %v2051_v38 }
 0x363   : > { %2291 = vst.msk [vmem:[%s3099_s29 + $0x58] sm:$0xff] %vm2279_vm6, %v2274_v57  ;;  %v1926_v63 = vmul.f32 %v1925_v44, %v1923_v49  ;;  %v2155_v47 = vand.u32 2147483647, %v4088_v52  ;;  %v2158_v12 = vand.u32 2139095040, %v4088_v52  ;;  %v2064_v34 = vshrl.u32 %v2063_v31, 5 }
 0x364   : > { %v4096_v56 = vsub.s32 %v2007_v37, %v2010_v41  ;;  %v2066_v18 = vsub.s32 32, %v2065_v19  ;;  %v2068_v17 = vshll.u32 %v2596_v55, %v2065_v19  ;;  %v2071_v3 = vshll.u32 %v2597_v59, %v2065_v19 }
 0x365   : > { %v1927_v29 = vxor.u32 2147483648, %v1926_v63  ;;  %v2074_v30 = vshll.u32 %v2598_v0, %v2065_v19  ;;  %v2077_v61 = vshll.u32 %v2599_v4, %v2065_v19  ;;  %v2059_v39 = vor.u32 8388608, %v2058_v43 }
 0x366   : > { %v2013_v40 = vsub.s32 0, %v4096_v56  ;;  %v2069_v14 = vshrl.u32 %v2597_v59, %v2066_v18  ;;  %v2072_v33 = vshrl.u32 %v2598_v0, %v2066_v18  ;;  %v2075_v50 = vshrl.u32 %v2599_v4, %v2066_v18 }
 0x367   : > { %v1928_v7 = vsel %vm1845_vm3, %v1927_v29, %v1926_v63  ;;  %v2078_v35 = vshrl.u32 %v2600_v8, %v2066_v18  ;;  %v2067_v54 = vshrl.u32 %v2596_v55, %v2066_v18  ;;  %v2080_v20 = vshll.u32 %v2600_v8, %v2065_v19 }
 0x368   : > { %v1931_v6 = vsel %vm4033_vm11, %v3828_v5, %v1928_v7  ;;  %v2416_v28 = vmin.u32 %v2013_v40, %v4096_v56  ;;  %v2070_v53 = vor.u32 %v2069_v14, %v2068_v17  ;;  %v2073_v62 = vor.u32 %v2072_v33, %v2071_v3 }
 0x369   : > { %2561 = vcosq.f32 %v1931_v6  ;;  %v2076_v46 = vor.u32 %v2075_v50, %v2074_v30  ;;  %v2079_v15 = vor.u32 %v2078_v35, %v2077_v61  ;;  %v2081_v21 = vshrl.u32 %v2601_v22, %v2066_v18 }
 0x36a   : > { %2563 = vsinq.f32 %v1931_v6  ;;  %v2015_v16 = vclz %v2416_v28  ;;  %vm2083_vm7 = vcmp.lt.s32.totalorder %v2064_v34, 1  ;;  %vm2085_vm10 = vcmp.lt.s32.totalorder %v2064_v34, 3 }
 0x36b   : > { %v2159_v37 = vshrl.u32 %v2158_v12, 23  ;;  %v2082_v10 = vor.u32 %v2081_v21, %v2080_v20  ;;  %vm2086_vm9 = vcmp.lt.s32.totalorder %v2064_v34, 4  ;;  %v2087_v32 = vsel %vm2083_vm7, %v2067_v54, %v2070_v53 }
 0x36c   : > { %v2417_v60 = vadd.s32 4294967294, %v2015_v16  ;;  %v2091_v48 = vsel %vm2083_vm7, %v2070_v53, %v2073_v62  ;;  %v2088_v9 = vsel %vm2086_vm9, %v2076_v46, 2102212464  ;;  %v2092_v13 = vsel %vm2086_vm9, %v2079_v15, 920167782 }
 0x36d   : > { %v2095_v51 = vsel %vm2083_vm7, %v2073_v62, %v2076_v46  ;;  %vm1938_vm13 = vcmp.lt.s32.totalorder %v4093_v42, 2  ;;  %v2089_v27 = vsel %vm2085_vm10, %v2073_v62, %v2088_v9  ;;  %v2093_v25 = vsel %vm2085_vm10, %v2076_v46, %v2092_v13 }
 0x36e   : > { %vm2418_vm12 = vcmp.lt.s32.totalorder %v2417_v60, 0  ;;  %v2096_v58 = vsel %vm2086_vm9, %v2082_v10, 1326507024  ;;  %vm1935_vm8 = vweird.f32 %v3828_v5  ;;  %vm2084_vm11 = vcmp.lt.s32.totalorder %v2064_v34, 2 }
 0x36f   : > { %v2018_v26 = vsel %vm2418_vm12, 0, %v2417_v60  ;;  %v2099_v49 = vshll.u32 %v2059_v39, 8  ;;  %v2094_v31 = vsel %vm2084_vm11, %v2091_v48, %v2093_v25  ;;  %v2097_v41 = vsel %vm2085_vm10, %v2079_v15, %v2096_v58 }
 0x370   : > { %v2019_v1 = vsub.s32 32, %v2018_v26  ;;  %v2023_v57 = vsub.s32 4294967266, %v2018_v26  ;;  %v2020_v44 = vshll.u32 %v4096_v56, %v2018_v26  ;;  %v2423_v19 = vadd.s32 4294967169, %v2159_v37 }
 0x371   : > { %v2090_v29 = vsel %vm2084_vm11, %v2087_v32, %v2089_v27  ;;  %v2098_v43 = vsel %vm2084_vm11, %v2095_v51, %v2097_v41  ;;  %v4129_v14 = vmul.u32.u64.low %v2099_v49, %v2094_v31  ;;  %v4130_v7 = vmul.u32.u64.high %v2099_v49, %v2094_v31, %v4129_v14 }
 0x372   : > { %v2021_v63 = vshrl.u32 %v2003_v45, %v2019_v1  ;;  %v2024_v18 = vadd.s32 127, %v2023_v57  ;;  %v4126_v40 = vmul.u32.u64.low %v2099_v49, %v2098_v43  ;;  %v4127_v17 = vmul.u32.u64.high %v2099_v49, %v2098_v43, %v4126_v40 }
 0x373   : > { %v2562_v12 = vpop.eup %2561  ;;  %v2165_v6 = vadd.s32 1, %v2423_v19  ;;  %vm1939_vm3 = vcmp.eq.s32.totalorder %v4093_v42, 0  ;;  %vm1942_vm14 = vcmp.eq.s32.totalorder %v4093_v42, 2  ;;  %v2033_v45 = vsub.s32 4, %v4084_v11 }
 0x374   : > { %v2564_v3 = vpop.eup %2563  ;;  %v1943_v33 = vxor.u32 2147483648, %v2562_v12  ;;  %v2022_v50 = vor.u32 %v2021_v63, %v2020_v44  ;;  %v2025_v56 = vshll.u32 %v2024_v18, 23  ;;  %vm4138_vm2 = vcmp.le.f32.partialorder %v1947_v36, 0.7853982 }
 0x375   : > { %v1940_v34 = vxor.u32 2147483648, %v2564_v3  ;;  %v2162_v53 = vand.u32 8388607, %v2155_v47  ;;  %vm2166_vm0 = vcmp.gt.s32.totalorder %v2165_v6, 0  ;;  %v2106_v35 = vmul.u32 %v2099_v49, %v2090_v29 }
 0x376   : > { %v1944_v28 = vsel %vm1942_vm14, %v1943_v33, %v2564_v3  ;;  %v2026_v61 = vor.u32 4788187, %v2025_v56  ;;  %vm2108_vm1 = vc.u32 %v4127_v17, %v4129_v14  ;;  %v2109_v16 = vadd.s32 1, %v4130_v7 }
 0x377   : > { %v1941_v62 = vsel %vm1939_vm3, %v2562_v12, %v1940_v34  ;;  %v2029_v46 = vcvt.s32.f32 %v2022_v50  ;;  %v2167_v54 = vsel %vm2166_vm0, %v2165_v6, 0  ;;  %vm1949_vm15 = vcmp.lt.s32.totalorder %v3929_v2, 0 }
 0x378   : > { %v1945_v39 = vsel %vm1938_vm13, %v1941_v62, %v1944_v28  ;;  %v2027_v36 = vand.u32 2147483647, %v2026_v61  ;;  %v2110_v20 = vsel %vm2108_vm1, %v2109_v16, %v4130_v7  ;;  %v2169_v21 = vand.u32 31, %v2167_v54 }
 0x379   : > { %v1946_v15 = vsel %vm1935_vm8, nan, %v1945_v39  ;;  %v2034_v42 = vsel %vm1949_vm15, %v2033_v45, %v4084_v11  ;;  %v2111_v10 = vadd.s32 %v2110_v20, %v2106_v35  ;;  %v2163_v32 = vor.u32 8388608, %v2162_v53 }
 0x37a   : > { %v2275_v60 = vmul.f32 %v4081_v23, %v1946_v15  ;;  %v2030_v37 = vmul.f32 %v2029_v46, %v2027_v36  ;;  %v2168_v48 = vshrl.u32 %v2167_v54, 5  ;;  %v2170_v9 = vsub.s32 32, %v2169_v21 }
 0x37b   : > { %v2172_v13 = vshll.u32 %v2596_v55, %v2169_v21  ;;  %v2112_v51 = vadd.s32 536870912, %v2111_v10  ;;  %v2175_v26 = vshll.u32 %v2597_v59, %v2169_v21  ;;  %v2178_v27 = vshll.u32 %v2598_v0, %v2169_v21 }
 0x37c   : > { %2292 = vst.msk [vmem:[%s3099_s29 + $0x60] sm:$0xff] %vm2279_vm6, %v2275_v60  ;;  %v2031_v5 = vxor.u32 2147483648, %v2030_v37  ;;  %v2173_v25 = vshrl.u32 %v2597_v59, %v2170_v9  ;;  %v2176_v58 = vshrl.u32 %v2598_v0, %v2170_v9  ;;  %v2179_v11 = vshrl.u32 %v2599_v4, %v2170_v9 }
 0x37d   : > { %v2181_v1 = vshll.u32 %v2599_v4, %v2169_v21  ;;  %v4168_v49 = vshrl.u32 %v2112_v51, 30  ;;  %v2182_v44 = vshrl.u32 %v2600_v8, %v2170_v9  ;;  %v2185_v31 = vshrl.u32 %v2601_v22, %v2170_v9 }
 0x37e   : > { %v2032_v57 = vsel %vm1949_vm15, %v2031_v5, %v2030_v37  ;;  %v2174_v59 = vor.u32 %v2173_v25, %v2172_v13  ;;  %v2177_v19 = vor.u32 %v2176_v58, %v2175_v26  ;;  %v2184_v0 = vshll.u32 %v2600_v8, %v2169_v21 }
 0x37f   : > { %v2035_v41 = vsel %vm4138_vm2, %v3929_v2, %v2032_v57  ;;  %v2036_v4 = vsel %vm4138_vm2, 0, %v2034_v42  ;;  %v2114_v63 = vshll.u32 %v4168_v49, 30  ;;  %v2183_v18 = vor.u32 %v2182_v44, %v2181_v1 }
 0x380   : > { %2565 = vcosq.f32 %v2035_v41  ;;  %v2180_v29 = vor.u32 %v2179_v11, %v2178_v27  ;;  %v2186_v43 = vor.u32 %v2185_v31, %v2184_v0  ;;  %vm2187_vm4 = vcmp.lt.s32.totalorder %v2168_v48, 1 }
 0x381   : > { %2567 = vsinq.f32 %v2035_v41  ;;  %v2115_v12 = vsub.s32 %v2111_v10, %v2114_v63  ;;  %v2040_v22 = vadd.s32 3, %v2036_v4  ;;  %vm2190_vm5 = vcmp.lt.s32.totalorder %v2168_v48, 4 }
 0x382   : > { %v2195_v40 = vsel %vm2187_vm4, %v2174_v59, %v2177_v19  ;;  %v2203_v7 = vshll.u32 %v2163_v32, 8  ;;  %vm2188_vm7 = vcmp.lt.s32.totalorder %v2168_v48, 2  ;;  %vm2189_vm10 = vcmp.lt.s32.totalorder %v2168_v48, 3 }
 0x383   : > { %v2117_v3 = vsub.s32 0, %v2115_v12  ;;  %v2196_v8 = vsel %vm2190_vm5, %v2183_v18, 920167782  ;;  %v2192_v33 = vsel %vm2190_vm5, %v2180_v29, 2102212464  ;;  %v2199_v56 = vsel %vm2187_vm4, %v2177_v19, %v2180_v29 }
 0x384   : > { %v2197_v50 = vsel %vm2189_vm10, %v2180_v29, %v2196_v8  ;;  %v2200_v6 = vsel %vm2190_vm5, %v2186_v43, 1326507024  ;;  %v2171_v45 = vshrl.u32 %v2596_v55, %v2170_v9  ;;  %v2041_v61 = vand.u32 3, %v2040_v22 }
 0x385   : > { %v2420_v34 = vmin.u32 %v2117_v3, %v2115_v12  ;;  %v2198_v28 = vsel %vm2188_vm7, %v2195_v40, %v2197_v50  ;;  %v2201_v30 = vsel %vm2189_vm10, %v2183_v18, %v2200_v6  ;;  %v2193_v36 = vsel %vm2189_vm10, %v2177_v19, %v2192_v33 }
 0x386   : > { %v2202_v53 = vsel %vm2188_vm7, %v2199_v56, %v2201_v30  ;;  %v4184_v62 = vmul.u32.u64.low %v2203_v7, %v2198_v28  ;;  %v4185_v35 = vmul.u32.u64.high %v2203_v7, %v2198_v28, %v4184_v62  ;;  %v2191_v39 = vsel %vm2187_vm4, %v2171_v45, %v2174_v59 }
 0x387   : > { %v2119_v16 = vclz %v2420_v34  ;;  %v4189_v46 = vmul.u32.u64.low %v2203_v7, %v2202_v53  ;;  %v4190_v54 = vmul.u32.u64.high %v2203_v7, %v2202_v53, %v4189_v46  ;;  %vm2042_vm9 = vcmp.lt.s32.totalorder %v2041_v61, 2 }
 0x388   : > { %v2194_v60 = vsel %vm2188_vm7, %v2191_v39, %v2193_v36  ;;  %v2213_v37 = vadd.s32 1, %v4185_v35  ;;  %vm2043_vm12 = vcmp.eq.s32.totalorder %v2041_v61, 0  ;;  %vm2046_vm13 = vcmp.eq.s32.totalorder %v2041_v61, 2 }
 0x389   : > { %v2421_v20 = vadd.s32 4294967294, %v2119_v16  ;;  %v2107_v32 = vadd.s32 %v4129_v14, %v4127_v17  ;;  %vm2212_vm11 = vc.u32 %v4190_v54, %v4184_v62  ;;  %v2210_v48 = vmul.u32 %v2203_v7, %v2194_v60 }
 0x38a   : > { %v2566_v15 = vpop.eup %2565  ;;  %vm2039_vm3 = vweird.f32 %v3929_v2  ;;  %v2214_v25 = vsel %vm2212_vm11, %v2213_v37, %v4185_v35  ;;  %v2137_v63 = vsub.s32 4, %v4168_v49  ;;  %vm2053_vm14 = vcmp.lt.s32.totalorder %v4047_v24, 0 }
 0x38b   : > { %v2568_v55 = vpop.eup %2567  ;;  %v2047_v21 = vxor.u32 2147483648, %v2566_v15  ;;  %vm2422_vm8 = vcmp.lt.s32.totalorder %v2421_v20, 0  ;;  %v2215_v17 = vadd.s32 %v2214_v25, %v2210_v48  ;;  %vm2052_vm2 = vcmp.le.f32.partialorder %v2051_v38, 0.7853982 }
 0x38c   : > { %v2044_v42 = vxor.u32 2147483648, %v2568_v55  ;;  %v2122_v9 = vsel %vm2422_vm8, 0, %v2421_v20  ;;  %v2138_v22 = vsel %vm2053_vm14, %v2137_v63, %v4168_v49  ;;  %v2211_v6 = vadd.s32 %v4184_v62, %v4190_v54 }
 0x38d   : > { %v2048_v10 = vsel %vm2046_vm13, %v2047_v21, %v2568_v55  ;;  %v2123_v5 = vsub.s32 32, %v2122_v9  ;;  %v2127_v51 = vsub.s32 4294967266, %v2122_v9  ;;  %v2124_v27 = vshll.u32 %v2115_v12, %v2122_v9 }
 0x38e   : > { %v2045_v13 = vsel %vm2043_vm12, %v2566_v15, %v2044_v42  ;;  %v2216_v31 = vadd.s32 536870912, %v2215_v17  ;;  %v2140_v8 = vsel %vm2052_vm2, 0, %v2138_v22  ;;  %vm2143_vm5 = vweird.f32 %v4047_v24 }
 0x38f   : > { %v2049_v26 = vsel %vm2042_vm9, %v2045_v13, %v2048_v10  ;;  %v2125_v11 = vshrl.u32 %v2107_v32, %v2123_v5  ;;  %v2128_v1 = vadd.s32 127, %v2127_v51  ;;  %v2144_v50 = vadd.s32 3, %v2140_v8 }
 0x390   : > { %v2050_v58 = vsel %vm2039_vm3, nan, %v2049_v26  ;;  %v2217_v59 = vshrl.u32 %v2216_v31, 30  ;;  %vm2157_vm7 = vcmp.lt.s32.totalorder %v4088_v52, 0  ;;  %vm2156_vm10 = vcmp.le.f32.partialorder %v2155_v47, 0.7853982 }
 0x391   : > { %v2276_v14 = vmul.f32 %v4081_v23, %v2050_v58  ;;  %v2126_v57 = vor.u32 %v2125_v11, %v2124_v27  ;;  %v2129_v44 = vshll.u32 %v2128_v1, 23  ;;  %v2145_v38 = vand.u32 3, %v2144_v50 }
 0x392   : > { %v2218_v0 = vshll.u32 %v2217_v59, 30  ;;  %v2241_v37 = vsub.s32 4, %v2217_v59  ;;  %vm2247_vm8 = vweird.f32 %v4088_v52 }
 0x393   : > { %2293 = vst.msk [vmem:[%s3099_s29 + $0x68] sm:$0xff] %vm2279_vm6, %v2276_v14  ;;  %v2130_v41 = vor.u32 4788187, %v2129_v44  ;;  %v2133_v2 = vcvt.s32.f32 %v2126_v57  ;;  %vm2150_vm1 = vcmp.eq.s32.totalorder %v2145_v38, 2  ;;  %vm2147_vm15 = vcmp.eq.s32.totalorder %v2145_v38, 0 }
 0x394   : > { %v2219_v18 = vsub.s32 %v2215_v17, %v2218_v0  ;;  %vm2146_vm4 = vcmp.lt.s32.totalorder %v2145_v38, 2  ;;  %v2242_v9 = vsel %vm2157_vm7, %v2241_v37, %v2217_v59 }
 0x395   : > { %v2131_v19 = vand.u32 2147483647, %v2130_v41 }
 0x396   : > { %v2221_v43 = vsub.s32 0, %v2219_v18 }
 0x397   : > { %v2134_v4 = vmul.f32 %v2133_v2, %v2131_v19 }
 0x398   : > { %v2424_v40 = vmin.u32 %v2221_v43, %v2219_v18 }
 0x399   : > { %v2135_v29 = vxor.u32 2147483648, %v2134_v4 }
 0x39a   : > { %v2223_v3 = vclz %v2424_v40 }
 0x39b   : > { %v2136_v12 = vsel %vm2053_vm14, %v2135_v29, %v2134_v4 }
 0x39c   : > { %v2139_v7 = vsel %vm2052_vm2, %v4047_v24, %v2136_v12  ;;  %v2425_v33 = vadd.s32 4294967294, %v2223_v3  ;;  %v2244_v24 = vsel %vm2156_vm10, 0, %v2242_v9 }
 0x39d   : > { %2569 = vcosq.f32 %v2139_v7  ;;  %v2248_v5 = vadd.s32 3, %v2244_v24 }
 0x39e   : > { %2571 = vsinq.f32 %v2139_v7  ;;  %vm2426_vm0 = vcmp.lt.s32.totalorder %v2425_v33, 0 }
 0x39f   : > { %v2226_v56 = vsel %vm2426_vm0, 0, %v2425_v33  ;;  %v2249_v51 = vand.u32 3, %v2248_v5 }
 0x3a0   : > { %v2227_v34 = vsub.s32 32, %v2226_v56  ;;  %v2231_v45 = vsub.s32 4294967266, %v2226_v56  ;;  %v2228_v28 = vshll.u32 %v2219_v18, %v2226_v56 }
 0x3a1   : > { %vm2254_vm9 = vcmp.eq.s32.totalorder %v2249_v51, 2  ;;  %vm2251_vm12 = vcmp.eq.s32.totalorder %v2249_v51, 0  ;;  %vm2250_vm13 = vcmp.lt.s32.totalorder %v2249_v51, 2 }
 0x3a2   : > { %v2229_v30 = vshrl.u32 %v2211_v6, %v2227_v34  ;;  %v2232_v49 = vadd.s32 127, %v2231_v45 }
 0x3a4   : > { %v2230_v53 = vor.u32 %v2229_v30, %v2228_v28  ;;  %v2233_v35 = vshll.u32 %v2232_v49, 23 }
 0x3a6   : > { %v2234_v46 = vor.u32 4788187, %v2233_v35  ;;  %v2237_v54 = vcvt.s32.f32 %v2230_v53 }
 0x3a7   : > { %v2570_v61 = vpop.eup %2569 }
 0x3a8   : > { %v2572_v16 = vpop.eup %2571  ;;  %v2151_v39 = vxor.u32 2147483648, %v2570_v61  ;;  %v2235_v62 = vand.u32 2147483647, %v2234_v46 }
 0x3a9   : > { %v2148_v36 = vxor.u32 2147483648, %v2572_v16 }
 0x3aa   : > { %v2152_v15 = vsel %vm2150_vm1, %v2151_v39, %v2572_v16  ;;  %v2238_v60 = vmul.f32 %v2237_v54, %v2235_v62 }
 0x3ab   : > { %v2149_v20 = vsel %vm2147_vm15, %v2570_v61, %v2148_v36 }
 0x3ac   : > { %v2153_v55 = vsel %vm2146_vm4, %v2149_v20, %v2152_v15  ;;  %v2239_v10 = vxor.u32 2147483648, %v2238_v60 }
 0x3ad   : > { %v2154_v21 = vsel %vm2143_vm5, nan, %v2153_v55 }
 0x3ae   : > { %v2277_v42 = vmul.f32 %v4081_v23, %v2154_v21  ;;  %v2240_v32 = vsel %vm2157_vm7, %v2239_v10, %v2238_v60 }
 0x3af   : > { %v2243_v13 = vsel %vm2156_vm10, %v4088_v52, %v2240_v32 }
 0x3b0   : > { %2294 = vst.msk [vmem:[%s3099_s29 + $0x70] sm:$0xff] %vm2279_vm6, %v2277_v42  ;;  %2573 = vcosq.f32 %v2243_v13 }
 0x3b1   : > { %2575 = vsinq.f32 %v2243_v13 }
 0x3ba   : > { %v2574_v48 = vpop.eup %2573 }
 0x3bb   : > { %v2576_v26 = vpop.eup %2575  ;;  %v2255_v27 = vxor.u32 2147483648, %v2574_v48 }
 0x3bc   : > { %v2252_v25 = vxor.u32 2147483648, %v2576_v26 }
 0x3bd   : > { %v2256_v58 = vsel %vm2254_vm9, %v2255_v27, %v2576_v26 }
 0x3be   : > { %v2253_v11 = vsel %vm2251_vm12, %v2574_v48, %v2252_v25 }
 0x3bf   : > { %v2257_v47 = vsel %vm2250_vm13, %v2253_v11, %v2256_v58 }
 0x3c0   : > { %v2258_v1 = vsel %vm2247_vm8, nan, %v2257_v47 }
 0x3c1   : > { %v2278_v17 = vmul.f32 %v4081_v23, %v2258_v1 }
 0x3c3   : > { %2295 = vst.msk [vmem:[%s3099_s29 + $0x78] sm:$0xff] %vm2279_vm6, %v2278_v17 }
 0x3c4 PF: > { %s12_s9 = sadd.s32 1, %s2589_s9  }
 0x3c5   : > { %p9_p4 = scmp.ge.s32.totalorder %s12_s9, 4  }
 0x3c7   :  { %11 = sbr.rel (!%p9_p4) target bundleno = 1 (0x1), region = 58 }

</bundles_post_ra>
